<compile_context>
chip_gen: v7x
topology: tpu7x:2x2x1
jax: 0.10.0
libtpu: 0.0.40
codegen_flags: <defaults>
</compile_context>

<pallas_src>
import functools

import jax
import jax.numpy as jnp
from jax.experimental import pallas as pl
from jax.experimental.pallas import tpu as pltpu


def _layer_norm(x, gamma, beta, eps):
    # PyTorch nn.LayerNorm: biased variance over the last axis, f32 math.
    mean = jnp.mean(x, axis=-1, keepdims=True)
    var = jnp.mean((x - mean) ** 2, axis=-1, keepdims=True)
    return (x - mean) * jax.lax.rsqrt(var + eps) * gamma + beta


def albef_encoder_kernel(
    x_ref, mask_ref,
    wq_ref, bq_ref, wk_ref, bk_ref, wv_ref, bv_ref, wo_ref, bo_ref,
    g1_ref, be1_ref, w1_ref, b1_ref, w2_ref, b2_ref, g2_ref, be2_ref,
    o_ref,
    act_ref,                      # VMEM scratch: (S, H) f32 activation carry
    *, num_heads, eps,
):
    layer = pl.program_id(1)

    # Load the input hidden states into the carry at the first layer step.
    @pl.when(layer == 0)
    def _():
        act_ref[...] = x_ref[0]

    x = act_ref[...]                              # (S, H) f32
    S, H = x.shape
    dh = H // num_heads
    scale = float(dh) ** -0.5

    # Additive attention-mask bias, hoisted out of the head loop:
    # 0.0 where mask==1 (attend), -1e30 where mask==0 (masked).
    mask = mask_ref[...].reshape(1, S)            # (1, S)
    bias = (mask - 1.0) * jnp.float32(1e30)       # broadcasts over query rows

    # ---- QKV projections: full-width bf16 matmuls, f32 accumulation ----
    xb = x.astype(jnp.bfloat16)
    q = jnp.dot(xb, wq_ref[0], preferred_element_type=jnp.float32) + bq_ref[0]
    k = jnp.dot(xb, wk_ref[0], preferred_element_type=jnp.float32) + bk_ref[0]
    v = jnp.dot(xb, wv_ref[0], preferred_element_type=jnp.float32) + bv_ref[0]
    q = q * scale                                 # fold 1/sqrt(dh) once into q
    qb = q.astype(jnp.bfloat16)
    kb = k.astype(jnp.bfloat16)
    vb = v.astype(jnp.bfloat16)

    # ---- multi-head attention with per-head accumulation into Wo ----
    attn_proj = jnp.zeros((S, H), jnp.float32)
    for h in range(num_heads):                    # static unroll over heads
        lo, hi = h * dh, (h + 1) * dh
        # scores: (S, dh) x (S, dh)^T -> (S, S), f32 accumulation
        s = jax.lax.dot_general(
            qb[:, lo:hi], kb[:, lo:hi], (((1,), (1,)), ((), ())),
            preferred_element_type=jnp.float32)
        s = s + bias                              # single add per head
        s_max = jnp.max(s, axis=-1, keepdims=True)
        e = jnp.exp(s - s_max)
        denom = jnp.sum(e, axis=-1, keepdims=True)
        p = e * pl.reciprocal(denom, approx=True)      # EUP, not VALU divide
        ctx = jnp.dot(p.astype(jnp.bfloat16), vb[:, lo:hi],
                      preferred_element_type=jnp.float32)   # (S, dh)
        # Accumulate the output projection per head (sublane-axis slice of Wo),
        # removing the lane-splicing concatenate.
        attn_proj = attn_proj + jnp.dot(
            ctx.astype(jnp.bfloat16), wo_ref[0, lo:hi, :],
            preferred_element_type=jnp.float32)
    attn_out = attn_proj + bo_ref[0]

    # ---- residual + LayerNorm (f32) ----
    norm1 = _layer_norm(attn_out + x, g1_ref[0], be1_ref[0], eps)

    # ---- feed-forward: dense1 -> GELU -> dense2 ----
    h1 = jnp.dot(norm1.astype(jnp.bfloat16), w1_ref[0],
                 preferred_element_type=jnp.float32) + b1_ref[0]
    # transform_act_fn: tanh-approx GELU (EUP-friendly). Swap to the exact-erf
    # form here if the deployed module config requires it.
    h1 = jax.nn.gelu(h1)
    h2 = jnp.dot(h1.astype(jnp.bfloat16), w2_ref[0],
                 preferred_element_type=jnp.float32) + b2_ref[0]

    # ---- residual + LayerNorm (f32) ----
    out = _layer_norm(h2 + norm1, g2_ref[0], be2_ref[0], eps)

    # Carry the activation to the next layer step; write the output only once.
    act_ref[...] = out

    @pl.when(layer == pl.num_programs(1) - 1)
    def _():
        o_ref[0] = out


def albef_transformer_encoder(x, mask, params, num_heads, eps):
    """x: (B, S, H) f32; mask: (B, 1, 1, S) f32; params: dict of L-stacked weights."""
    B, S, H = x.shape
    L = params["wq"].shape[0]
    I = params["w1"].shape[2]

    def wspec(shape):
        # Per-layer slice of an L-stacked parameter: block index (l, 0, ..., 0).
        zeros = (0,) * len(shape)
        return pl.BlockSpec((1,) + tuple(shape), lambda b, l, z=zeros: (l,) + z)

    in_specs = [
        pl.BlockSpec((1, S, H), lambda b, l: (b, 0, 0)),         # hidden states
        pl.BlockSpec((1, 1, 1, S), lambda b, l: (b, 0, 0, 0)),   # attention mask
        wspec((H, H)), wspec((1, H)),   # Wq, bq
        wspec((H, H)), wspec((1, H)),   # Wk, bk
        wspec((H, H)), wspec((1, H)),   # Wv, bv
        wspec((H, H)), wspec((1, H)),   # Wo, bo
        wspec((1, H)), wspec((1, H)),   # LN1 gamma, beta
        wspec((H, I)), wspec((1, I)),   # dense1 W, b
        wspec((I, H)), wspec((1, H)),   # dense2 W, b
        wspec((1, H)), wspec((1, H)),   # LN2 gamma, beta
    ]

    kernel = functools.partial(albef_encoder_kernel, num_heads=num_heads, eps=eps)
    # NOTE: for real ALBEF sizes raise vmem_limit_bytes and tile the FFN over I
    # (v7x 64 MiB VMEM); unnecessary at these shapes.
    return pl.pallas_call(
        kernel,
        out_shape=jax.ShapeDtypeStruct((B, S, H), jnp.float32),
        grid_spec=pltpu.PrefetchScalarGridSpec(
            num_scalar_prefetch=0,
            grid=(B, L),                       # L is the inner (fast) axis
            in_specs=in_specs,
            out_specs=pl.BlockSpec((1, S, H), lambda b, l: (b, 0, 0)),
            scratch_shapes=[pltpu.VMEM((S, H), jnp.float32)],
        ),
        compiler_params=pltpu.CompilerParams(
            dimension_semantics=("parallel", "arbitrary")),
    )(
        x, mask,
        params["wq"], params["bq"], params["wk"], params["bk"],
        params["wv"], params["bv"], params["wo"], params["bo"],
        params["g1"], params["be1"], params["w1"], params["b1"],
        params["w2"], params["b2"], params["g2"], params["be2"],
    )


def init_params(key, num_layers, H, I):
    """L-stacked parameters. Linear weights are (in, out) = PyTorch W.T and are
    stored in bf16 for the MXU; biases / LayerNorm params stay f32."""
    ks = jax.random.split(key, 12)
    n = lambda k, s: 0.02 * jax.random.normal(k, s, jnp.float32)
    bf = jnp.bfloat16
    L = num_layers
    return dict(
        wq=n(ks[0], (L, H, H)).astype(bf), bq=n(ks[1], (L, 1, H)),
        wk=n(ks[2], (L, H, H)).astype(bf), bk=n(ks[3], (L, 1, H)),
        wv=n(ks[4], (L, H, H)).astype(bf), bv=n(ks[5], (L, 1, H)),
        wo=n(ks[6], (L, H, H)).astype(bf), bo=n(ks[7], (L, 1, H)),
        g1=jnp.ones((L, 1, H), jnp.float32), be1=jnp.zeros((L, 1, H), jnp.float32),
        w1=n(ks[8], (L, H, I)).astype(bf), b1=n(ks[9], (L, 1, I)),
        w2=n(ks[10], (L, I, H)).astype(bf), b2=n(ks[11], (L, 1, H)),
        g2=jnp.ones((L, 1, H), jnp.float32), be2=jnp.zeros((L, 1, H), jnp.float32),
    )


if __name__ == "__main__":
    # Small shapes consistent with the module's forward pass.
    B, S = 2, 8
    hidden_size = 32
    intermediate_size = 64
    num_attention_heads = 4
    num_hidden_layers = 2
    layer_norm_eps = 1e-12

    key = jax.random.PRNGKey(0)
    kx, kp = jax.random.split(key)
    hidden_states = jax.random.normal(kx, (B, S, hidden_size), jnp.float32)

    # Mask out the last 2 key positions of batch element 1.
    attention_mask = jnp.ones((B, 1, 1, S), jnp.float32)
    attention_mask = attention_mask.at[1, 0, 0, S - 2:].set(0.0)

    params = init_params(kp, num_hidden_layers, hidden_size, intermediate_size)

    out = albef_transformer_encoder(
        hidden_states, attention_mask, params,
        num_attention_heads, layer_norm_eps,
    )
    out = jax.block_until_ready(out)
    assert out.shape == (B, S, hidden_size)
    assert bool(jnp.all(jnp.isfinite(out)))
    print("KERNEL_OK")
</pallas_src>

<mosaic_0001>
module attributes {stable_mosaic.version = 11 : i64} {
  func.func @albef_encoder_kernel(%arg0: i32, %arg1: i32, %arg2: memref<1x8x32xf32, #tpu.memory_space<vmem>>, %arg3: memref<1x1x1x8xf32, #tpu.memory_space<vmem>>, %arg4: memref<1x32x32xbf16, #tpu.memory_space<vmem>>, %arg5: memref<1x1x32xf32, #tpu.memory_space<vmem>>, %arg6: memref<1x32x32xbf16, #tpu.memory_space<vmem>>, %arg7: memref<1x1x32xf32, #tpu.memory_space<vmem>>, %arg8: memref<1x32x32xbf16, #tpu.memory_space<vmem>>, %arg9: memref<1x1x32xf32, #tpu.memory_space<vmem>>, %arg10: memref<1x32x32xbf16, #tpu.memory_space<vmem>>, %arg11: memref<1x1x32xf32, #tpu.memory_space<vmem>>, %arg12: memref<1x1x32xf32, #tpu.memory_space<vmem>>, %arg13: memref<1x1x32xf32, #tpu.memory_space<vmem>>, %arg14: memref<1x32x64xbf16, #tpu.memory_space<vmem>>, %arg15: memref<1x1x64xf32, #tpu.memory_space<vmem>>, %arg16: memref<1x64x32xbf16, #tpu.memory_space<vmem>>, %arg17: memref<1x1x32xf32, #tpu.memory_space<vmem>>, %arg18: memref<1x1x32xf32, #tpu.memory_space<vmem>>, %arg19: memref<1x1x32xf32, #tpu.memory_space<vmem>>, %arg20: memref<1x8x32xf32, #tpu.memory_space<vmem>>, %arg21: memref<8x32xf32, #tpu.memory_space<vmem>>) attributes {dimension_semantics = [#tpu.dimension_semantics<parallel>, #tpu.dimension_semantics<arbitrary>], iteration_bounds = array<i64: 2, 2>, scalar_prefetch = 0 : i64, scratch_operands = 1 : i64, tpu.core_type = #tpu.core_type<tc>, window_params = [{transform_indices = @transform_0, window_bounds = array<i64: 1, 8, 32>}, {transform_indices = @transform_1, window_bounds = array<i64: 1, 1, 1, 8>}, {transform_indices = @transform_2, window_bounds = array<i64: 1, 32, 32>}, {transform_indices = @transform_3, window_bounds = array<i64: 1, 1, 32>}, {transform_indices = @transform_4, window_bounds = array<i64: 1, 32, 32>}, {transform_indices = @transform_5, window_bounds = array<i64: 1, 1, 32>}, {transform_indices = @transform_6, window_bounds = array<i64: 1, 32, 32>}, {transform_indices = @transform_7, window_bounds = array<i64: 1, 1, 32>}, {transform_indices = @transform_8, window_bounds = array<i64: 1, 32, 32>}, {transform_indices = @transform_9, window_bounds = array<i64: 1, 1, 32>}, {transform_indices = @transform_10, window_bounds = array<i64: 1, 1, 32>}, {transform_indices = @transform_11, window_bounds = array<i64: 1, 1, 32>}, {transform_indices = @transform_12, window_bounds = array<i64: 1, 32, 64>}, {transform_indices = @transform_13, window_bounds = array<i64: 1, 1, 64>}, {transform_indices = @transform_14, window_bounds = array<i64: 1, 64, 32>}, {transform_indices = @transform_15, window_bounds = array<i64: 1, 1, 32>}, {transform_indices = @transform_16, window_bounds = array<i64: 1, 1, 32>}, {transform_indices = @transform_17, window_bounds = array<i64: 1, 1, 32>}, {transform_indices = @transform_18, window_bounds = array<i64: 1, 8, 32>}]} {
    %c0_i32 = arith.constant 0 : i32
    %0 = arith.cmpi eq, %arg1, %c0_i32 : i32
    %1 = arith.extui %0 : i1 to i32
    %c0_i32_0 = arith.constant 0 : i32
    %2 = arith.cmpi ne, %1, %c0_i32_0 : i32
    scf.if %2 {
      %c0_105 = arith.constant 0 : index
      %c0_106 = arith.constant 0 : index
      %c0_107 = arith.constant 0 : index
      %221 = vector.load %arg2[%c0_105, %c0_106, %c0_107] : memref<1x8x32xf32, #tpu.memory_space<vmem>>, vector<1x8x32xf32>
      %222 = vector.shape_cast %221 : vector<1x8x32xf32> to vector<8x32xf32>
      %c0_108 = arith.constant 0 : index
      %c0_109 = arith.constant 0 : index
      %223 = vector.load %arg21[%c0_108, %c0_109] : memref<8x32xf32, #tpu.memory_space<vmem>>, vector<8x32xf32>
      tpu.vector_store %arg21[%c0_108, %c0_109], %222 {strides = array<i32>} : memref<8x32xf32, #tpu.memory_space<vmem>>, vector<8x32xf32>,
    } else {
    }
    %c0 = arith.constant 0 : index
    %c0_1 = arith.constant 0 : index
    %3 = vector.load %arg21[%c0, %c0_1] : memref<8x32xf32, #tpu.memory_space<vmem>>, vector<8x32xf32>
    %c0_2 = arith.constant 0 : index
    %c0_3 = arith.constant 0 : index
    %c0_4 = arith.constant 0 : index
    %c0_5 = arith.constant 0 : index
    %4 = vector.load %arg3[%c0_2, %c0_3, %c0_4, %c0_5] : memref<1x1x1x8xf32, #tpu.memory_space<vmem>>, vector<1x1x1x8xf32>
    %5 = vector.shape_cast %4 : vector<1x1x1x8xf32> to vector<1x8xf32>
    %cst = arith.constant 1.000000e+00 : f32
    %6 = vector.broadcast %cst : f32 to vector<1x8xf32>
    %7 = arith.subf %5, %6 : vector<1x8xf32>
    %cst_6 = arith.constant 1.000000e+30 : f32
    %8 = vector.broadcast %cst_6 : f32 to vector<1x8xf32>
    %9 = arith.mulf %7, %8 : vector<1x8xf32>
    %10 = arith.truncf %3 : vector<8x32xf32> to vector<8x32xbf16>
    %c0_7 = arith.constant 0 : index
    %c0_8 = arith.constant 0 : index
    %c0_9 = arith.constant 0 : index
    %11 = vector.load %arg4[%c0_7, %c0_8, %c0_9] : memref<1x32x32xbf16, #tpu.memory_space<vmem>>, vector<1x32x32xbf16>
    %12 = vector.shape_cast %11 : vector<1x32x32xbf16> to vector<32x32xbf16>
    %cst_10 = arith.constant dense<0.000000e+00> : vector<8x32xf32>
    %13 = tpu.matmul %10, %12, %cst_10 {dimension_numbers = #tpu.dot_dimension_numbers<[1], [0], [0], [1], [0, 0, 1, 1], [], []>} : vector<8x32xbf16>, vector<32x32xbf16>, vector<8x32xf32> -> vector<8x32xf32>
    %c0_11 = arith.constant 0 : index
    %c0_12 = arith.constant 0 : index
    %c0_13 = arith.constant 0 : index
    %14 = vector.load %arg5[%c0_11, %c0_12, %c0_13] : memref<1x1x32xf32, #tpu.memory_space<vmem>>, vector<1x1x32xf32>
    %15 = vector.shape_cast %14 : vector<1x1x32xf32> to vector<1x32xf32>
    %16 = vector.broadcast %15 : vector<1x32xf32> to vector<8x32xf32>
    %17 = arith.addf %13, %16 : vector<8x32xf32>
    %c0_14 = arith.constant 0 : index
    %c0_15 = arith.constant 0 : index
    %c0_16 = arith.constant 0 : index
    %18 = vector.load %arg6[%c0_14, %c0_15, %c0_16] : memref<1x32x32xbf16, #tpu.memory_space<vmem>>, vector<1x32x32xbf16>
    %19 = vector.shape_cast %18 : vector<1x32x32xbf16> to vector<32x32xbf16>
    %cst_17 = arith.constant dense<0.000000e+00> : vector<8x32xf32>
    %20 = tpu.matmul %10, %19, %cst_17 {dimension_numbers = #tpu.dot_dimension_numbers<[1], [0], [0], [1], [0, 0, 1, 1], [], []>} : vector<8x32xbf16>, vector<32x32xbf16>, vector<8x32xf32> -> vector<8x32xf32>
    %c0_18 = arith.constant 0 : index
    %c0_19 = arith.constant 0 : index
    %c0_20 = arith.constant 0 : index
    %21 = vector.load %arg7[%c0_18, %c0_19, %c0_20] : memref<1x1x32xf32, #tpu.memory_space<vmem>>, vector<1x1x32xf32>
    %22 = vector.shape_cast %21 : vector<1x1x32xf32> to vector<1x32xf32>
    %23 = vector.broadcast %22 : vector<1x32xf32> to vector<8x32xf32>
    %24 = arith.addf %20, %23 : vector<8x32xf32>
    %c0_21 = arith.constant 0 : index
    %c0_22 = arith.constant 0 : index
    %c0_23 = arith.constant 0 : index
    %25 = vector.load %arg8[%c0_21, %c0_22, %c0_23] : memref<1x32x32xbf16, #tpu.memory_space<vmem>>, vector<1x32x32xbf16>
    %26 = vector.shape_cast %25 : vector<1x32x32xbf16> to vector<32x32xbf16>
    %cst_24 = arith.constant dense<0.000000e+00> : vector<8x32xf32>
    %27 = tpu.matmul %10, %26, %cst_24 {dimension_numbers = #tpu.dot_dimension_numbers<[1], [0], [0], [1], [0, 0, 1, 1], [], []>} : vector<8x32xbf16>, vector<32x32xbf16>, vector<8x32xf32> -> vector<8x32xf32>
    %c0_25 = arith.constant 0 : index
    %c0_26 = arith.constant 0 : index
    %c0_27 = arith.constant 0 : index
    %28 = vector.load %arg9[%c0_25, %c0_26, %c0_27] : memref<1x1x32xf32, #tpu.memory_space<vmem>>, vector<1x1x32xf32>
    %29 = vector.shape_cast %28 : vector<1x1x32xf32> to vector<1x32xf32>
    %30 = vector.broadcast %29 : vector<1x32xf32> to vector<8x32xf32>
    %31 = arith.addf %27, %30 : vector<8x32xf32>
    %cst_28 = arith.constant 0.353553385 : f32
    %32 = vector.broadcast %cst_28 : f32 to vector<8x32xf32>
    %33 = arith.mulf %17, %32 : vector<8x32xf32>
    %34 = arith.truncf %33 : vector<8x32xf32> to vector<8x32xbf16>
    %35 = arith.truncf %24 : vector<8x32xf32> to vector<8x32xbf16>
    %36 = arith.truncf %31 : vector<8x32xf32> to vector<8x32xbf16>
    %cst_29 = arith.constant 0.000000e+00 : f32
    %37 = vector.broadcast %cst_29 : f32 to vector<8x32xf32>
    %38 = vector.extract_strided_slice %34 {offsets = [0, 0], sizes = [8, 8], strides = [1, 1]} : vector<8x32xbf16> to vector<8x8xbf16>
    %39 = vector.extract_strided_slice %35 {offsets = [0, 0], sizes = [8, 8], strides = [1, 1]} : vector<8x32xbf16> to vector<8x8xbf16>
    %cst_30 = arith.constant dense<0.000000e+00> : vector<8x8xf32>
    %40 = tpu.matmul %38, %39, %cst_30 {dimension_numbers = #tpu.dot_dimension_numbers<[1], [1], [0], [0], [0, 0, 1, 0], [], []>} : vector<8x8xbf16>, vector<8x8xbf16>, vector<8x8xf32> -> vector<8x8xf32>
    %41 = vector.broadcast %9 : vector<1x8xf32> to vector<8x8xf32>
    %42 = arith.addf %40, %41 : vector<8x8xf32>
    %cst_31 = arith.constant dense<0xFF800000> : vector<8xf32>
    %43 = vector.multi_reduction <maximumf>, %42, %cst_31 [1] : vector<8x8xf32> to vector<8xf32>
    %44 = vector.shape_cast %43 : vector<8xf32> to vector<8x1xf32>
    %45 = vector.broadcast %44 : vector<8x1xf32> to vector<8x8xf32>
    %46 = arith.subf %42, %45 : vector<8x8xf32>
    %47 = math.exp %46 : vector<8x8xf32>
    %cst_32 = arith.constant dense<0.000000e+00> : vector<8xf32>
    %48 = vector.multi_reduction <add>, %47, %cst_32 [1] : vector<8x8xf32> to vector<8xf32>
    %49 = vector.shape_cast %48 : vector<8xf32> to vector<8x1xf32>
    %50 = tpu.reciprocal %49 {approx = true} : vector<8x1xf32> -> vector<8x1xf32>
    %51 = vector.broadcast %50 : vector<8x1xf32> to vector<8x8xf32>
    %52 = arith.mulf %47, %51 : vector<8x8xf32>
    %53 = arith.truncf %52 : vector<8x8xf32> to vector<8x8xbf16>
    %54 = vector.extract_strided_slice %36 {offsets = [0, 0], sizes = [8, 8], strides = [1, 1]} : vector<8x32xbf16> to vector<8x8xbf16>
    %cst_33 = arith.constant dense<0.000000e+00> : vector<8x8xf32>
    %55 = tpu.matmul %53, %54, %cst_33 {dimension_numbers = #tpu.dot_dimension_numbers<[1], [0], [0], [1], [0, 0, 1, 1], [], []>} : vector<8x8xbf16>, vector<8x8xbf16>, vector<8x8xf32> -> vector<8x8xf32>
    %56 = arith.truncf %55 : vector<8x8xf32> to vector<8x8xbf16>
    %c0_34 = arith.constant 0 : index
    %c0_35 = arith.constant 0 : index
    %c0_36 = arith.constant 0 : index
    %57 = vector.load %arg10[%c0_34, %c0_35, %c0_36] : memref<1x32x32xbf16, #tpu.memory_space<vmem>>, vector<1x8x32xbf16>
    %58 = vector.shape_cast %57 : vector<1x8x32xbf16> to vector<8x32xbf16>
    %cst_37 = arith.constant dense<0.000000e+00> : vector<8x32xf32>
    %59 = tpu.matmul %56, %58, %cst_37 {dimension_numbers = #tpu.dot_dimension_numbers<[1], [0], [0], [1], [0, 0, 1, 1], [], []>} : vector<8x8xbf16>, vector<8x32xbf16>, vector<8x32xf32> -> vector<8x32xf32>
    %60 = arith.addf %37, %59 : vector<8x32xf32>
    %61 = vector.extract_strided_slice %34 {offsets = [0, 8], sizes = [8, 8], strides = [1, 1]} : vector<8x32xbf16> to vector<8x8xbf16>
    %62 = vector.extract_strided_slice %35 {offsets = [0, 8], sizes = [8, 8], strides = [1, 1]} : vector<8x32xbf16> to vector<8x8xbf16>
    %cst_38 = arith.constant dense<0.000000e+00> : vector<8x8xf32>
    %63 = tpu.matmul %61, %62, %cst_38 {dimension_numbers = #tpu.dot_dimension_numbers<[1], [1], [0], [0], [0, 0, 1, 0], [], []>} : vector<8x8xbf16>, vector<8x8xbf16>, vector<8x8xf32> -> vector<8x8xf32>
    %64 = vector.broadcast %9 : vector<1x8xf32> to vector<8x8xf32>
    %65 = arith.addf %63, %64 : vector<8x8xf32>
    %cst_39 = arith.constant dense<0xFF800000> : vector<8xf32>
    %66 = vector.multi_reduction <maximumf>, %65, %cst_39 [1] : vector<8x8xf32> to vector<8xf32>
    %67 = vector.shape_cast %66 : vector<8xf32> to vector<8x1xf32>
    %68 = vector.broadcast %67 : vector<8x1xf32> to vector<8x8xf32>
    %69 = arith.subf %65, %68 : vector<8x8xf32>
    %70 = math.exp %69 : vector<8x8xf32>
    %cst_40 = arith.constant dense<0.000000e+00> : vector<8xf32>
    %71 = vector.multi_reduction <add>, %70, %cst_40 [1] : vector<8x8xf32> to vector<8xf32>
    %72 = vector.shape_cast %71 : vector<8xf32> to vector<8x1xf32>
    %73 = tpu.reciprocal %72 {approx = true} : vector<8x1xf32> -> vector<8x1xf32>
    %74 = vector.broadcast %73 : vector<8x1xf32> to vector<8x8xf32>
    %75 = arith.mulf %70, %74 : vector<8x8xf32>
    %76 = arith.truncf %75 : vector<8x8xf32> to vector<8x8xbf16>
    %77 = vector.extract_strided_slice %36 {offsets = [0, 8], sizes = [8, 8], strides = [1, 1]} : vector<8x32xbf16> to vector<8x8xbf16>
    %cst_41 = arith.constant dense<0.000000e+00> : vector<8x8xf32>
    %78 = tpu.matmul %76, %77, %cst_41 {dimension_numbers = #tpu.dot_dimension_numbers<[1], [0], [0], [1], [0, 0, 1, 1], [], []>} : vector<8x8xbf16>, vector<8x8xbf16>, vector<8x8xf32> -> vector<8x8xf32>
    %79 = arith.truncf %78 : vector<8x8xf32> to vector<8x8xbf16>
    %c0_42 = arith.constant 0 : index
    %c8 = arith.constant 8 : index
    %c0_43 = arith.constant 0 : index
    %80 = vector.load %arg10[%c0_42, %c8, %c0_43] : memref<1x32x32xbf16, #tpu.memory_space<vmem>>, vector<1x8x32xbf16>
    %81 = vector.shape_cast %80 : vector<1x8x32xbf16> to vector<8x32xbf16>
    %cst_44 = arith.constant dense<0.000000e+00> : vector<8x32xf32>
    %82 = tpu.matmul %79, %81, %cst_44 {dimension_numbers = #tpu.dot_dimension_numbers<[1], [0], [0], [1], [0, 0, 1, 1], [], []>} : vector<8x8xbf16>, vector<8x32xbf16>, vector<8x32xf32> -> vector<8x32xf32>
    %83 = arith.addf %60, %82 : vector<8x32xf32>
    %84 = vector.extract_strided_slice %34 {offsets = [0, 16], sizes = [8, 8], strides = [1, 1]} : vector<8x32xbf16> to vector<8x8xbf16>
    %85 = vector.extract_strided_slice %35 {offsets = [0, 16], sizes = [8, 8], strides = [1, 1]} : vector<8x32xbf16> to vector<8x8xbf16>
    %cst_45 = arith.constant dense<0.000000e+00> : vector<8x8xf32>
    %86 = tpu.matmul %84, %85, %cst_45 {dimension_numbers = #tpu.dot_dimension_numbers<[1], [1], [0], [0], [0, 0, 1, 0], [], []>} : vector<8x8xbf16>, vector<8x8xbf16>, vector<8x8xf32> -> vector<8x8xf32>
    %87 = vector.broadcast %9 : vector<1x8xf32> to vector<8x8xf32>
    %88 = arith.addf %86, %87 : vector<8x8xf32>
    %cst_46 = arith.constant dense<0xFF800000> : vector<8xf32>
    %89 = vector.multi_reduction <maximumf>, %88, %cst_46 [1] : vector<8x8xf32> to vector<8xf32>
    %90 = vector.shape_cast %89 : vector<8xf32> to vector<8x1xf32>
    %91 = vector.broadcast %90 : vector<8x1xf32> to vector<8x8xf32>
    %92 = arith.subf %88, %91 : vector<8x8xf32>
    %93 = math.exp %92 : vector<8x8xf32>
    %cst_47 = arith.constant dense<0.000000e+00> : vector<8xf32>
    %94 = vector.multi_reduction <add>, %93, %cst_47 [1] : vector<8x8xf32> to vector<8xf32>
    %95 = vector.shape_cast %94 : vector<8xf32> to vector<8x1xf32>
    %96 = tpu.reciprocal %95 {approx = true} : vector<8x1xf32> -> vector<8x1xf32>
    %97 = vector.broadcast %96 : vector<8x1xf32> to vector<8x8xf32>
    %98 = arith.mulf %93, %97 : vector<8x8xf32>
    %99 = arith.truncf %98 : vector<8x8xf32> to vector<8x8xbf16>
    %100 = vector.extract_strided_slice %36 {offsets = [0, 16], sizes = [8, 8], strides = [1, 1]} : vector<8x32xbf16> to vector<8x8xbf16>
    %cst_48 = arith.constant dense<0.000000e+00> : vector<8x8xf32>
    %101 = tpu.matmul %99, %100, %cst_48 {dimension_numbers = #tpu.dot_dimension_numbers<[1], [0], [0], [1], [0, 0, 1, 1], [], []>} : vector<8x8xbf16>, vector<8x8xbf16>, vector<8x8xf32> -> vector<8x8xf32>
    %102 = arith.truncf %101 : vector<8x8xf32> to vector<8x8xbf16>
    %c0_49 = arith.constant 0 : index
    %c16 = arith.constant 16 : index
    %c0_50 = arith.constant 0 : index
    %103 = vector.load %arg10[%c0_49, %c16, %c0_50] : memref<1x32x32xbf16, #tpu.memory_space<vmem>>, vector<1x8x32xbf16>
    %104 = vector.shape_cast %103 : vector<1x8x32xbf16> to vector<8x32xbf16>
    %cst_51 = arith.constant dense<0.000000e+00> : vector<8x32xf32>
    %105 = tpu.matmul %102, %104, %cst_51 {dimension_numbers = #tpu.dot_dimension_numbers<[1], [0], [0], [1], [0, 0, 1, 1], [], []>} : vector<8x8xbf16>, vector<8x32xbf16>, vector<8x32xf32> -> vector<8x32xf32>
    %106 = arith.addf %83, %105 : vector<8x32xf32>
    %107 = vector.extract_strided_slice %34 {offsets = [0, 24], sizes = [8, 8], strides = [1, 1]} : vector<8x32xbf16> to vector<8x8xbf16>
    %108 = vector.extract_strided_slice %35 {offsets = [0, 24], sizes = [8, 8], strides = [1, 1]} : vector<8x32xbf16> to vector<8x8xbf16>
    %cst_52 = arith.constant dense<0.000000e+00> : vector<8x8xf32>
    %109 = tpu.matmul %107, %108, %cst_52 {dimension_numbers = #tpu.dot_dimension_numbers<[1], [1], [0], [0], [0, 0, 1, 0], [], []>} : vector<8x8xbf16>, vector<8x8xbf16>, vector<8x8xf32> -> vector<8x8xf32>
    %110 = vector.broadcast %9 : vector<1x8xf32> to vector<8x8xf32>
    %111 = arith.addf %109, %110 : vector<8x8xf32>
    %cst_53 = arith.constant dense<0xFF800000> : vector<8xf32>
    %112 = vector.multi_reduction <maximumf>, %111, %cst_53 [1] : vector<8x8xf32> to vector<8xf32>
    %113 = vector.shape_cast %112 : vector<8xf32> to vector<8x1xf32>
    %114 = vector.broadcast %113 : vector<8x1xf32> to vector<8x8xf32>
    %115 = arith.subf %111, %114 : vector<8x8xf32>
    %116 = math.exp %115 : vector<8x8xf32>
    %cst_54 = arith.constant dense<0.000000e+00> : vector<8xf32>
    %117 = vector.multi_reduction <add>, %116, %cst_54 [1] : vector<8x8xf32> to vector<8xf32>
    %118 = vector.shape_cast %117 : vector<8xf32> to vector<8x1xf32>
    %119 = tpu.reciprocal %118 {approx = true} : vector<8x1xf32> -> vector<8x1xf32>
    %120 = vector.broadcast %119 : vector<8x1xf32> to vector<8x8xf32>
    %121 = arith.mulf %116, %120 : vector<8x8xf32>
    %122 = arith.truncf %121 : vector<8x8xf32> to vector<8x8xbf16>
    %123 = vector.extract_strided_slice %36 {offsets = [0, 24], sizes = [8, 8], strides = [1, 1]} : vector<8x32xbf16> to vector<8x8xbf16>
    %cst_55 = arith.constant dense<0.000000e+00> : vector<8x8xf32>
    %124 = tpu.matmul %122, %123, %cst_55 {dimension_numbers = #tpu.dot_dimension_numbers<[1], [0], [0], [1], [0, 0, 1, 1], [], []>} : vector<8x8xbf16>, vector<8x8xbf16>, vector<8x8xf32> -> vector<8x8xf32>
    %125 = arith.truncf %124 : vector<8x8xf32> to vector<8x8xbf16>
    %c0_56 = arith.constant 0 : index
    %c24 = arith.constant 24 : index
    %c0_57 = arith.constant 0 : index
    %126 = vector.load %arg10[%c0_56, %c24, %c0_57] : memref<1x32x32xbf16, #tpu.memory_space<vmem>>, vector<1x8x32xbf16>
    %127 = vector.shape_cast %126 : vector<1x8x32xbf16> to vector<8x32xbf16>
    %cst_58 = arith.constant dense<0.000000e+00> : vector<8x32xf32>
    %128 = tpu.matmul %125, %127, %cst_58 {dimension_numbers = #tpu.dot_dimension_numbers<[1], [0], [0], [1], [0, 0, 1, 1], [], []>} : vector<8x8xbf16>, vector<8x32xbf16>, vector<8x32xf32> -> vector<8x32xf32>
    %129 = arith.addf %106, %128 : vector<8x32xf32>
    %c0_59 = arith.constant 0 : index
    %c0_60 = arith.constant 0 : index
    %c0_61 = arith.constant 0 : index
    %130 = vector.load %arg11[%c0_59, %c0_60, %c0_61] : memref<1x1x32xf32, #tpu.memory_space<vmem>>, vector<1x1x32xf32>
    %131 = vector.shape_cast %130 : vector<1x1x32xf32> to vector<1x32xf32>
    %132 = vector.broadcast %131 : vector<1x32xf32> to vector<8x32xf32>
    %133 = arith.addf %129, %132 : vector<8x32xf32>
    %134 = arith.addf %133, %3 : vector<8x32xf32>
    %c0_62 = arith.constant 0 : index
    %c0_63 = arith.constant 0 : index
    %c0_64 = arith.constant 0 : index
    %135 = vector.load %arg12[%c0_62, %c0_63, %c0_64] : memref<1x1x32xf32, #tpu.memory_space<vmem>>, vector<1x1x32xf32>
    %136 = vector.shape_cast %135 : vector<1x1x32xf32> to vector<1x32xf32>
    %c0_65 = arith.constant 0 : index
    %c0_66 = arith.constant 0 : index
    %c0_67 = arith.constant 0 : index
    %137 = vector.load %arg13[%c0_65, %c0_66, %c0_67] : memref<1x1x32xf32, #tpu.memory_space<vmem>>, vector<1x1x32xf32>
    %138 = vector.shape_cast %137 : vector<1x1x32xf32> to vector<1x32xf32>
    %cst_68 = arith.constant dense<0.000000e+00> : vector<8xf32>
    %139 = vector.multi_reduction <add>, %134, %cst_68 [1] : vector<8x32xf32> to vector<8xf32>
    %140 = vector.shape_cast %139 : vector<8xf32> to vector<8x1xf32>
    %cst_69 = arith.constant 3.200000e+01 : f32
    %141 = vector.broadcast %cst_69 : f32 to vector<8x1xf32>
    %142 = arith.divf %140, %141 : vector<8x1xf32>
    %143 = vector.broadcast %142 : vector<8x1xf32> to vector<8x32xf32>
    %144 = arith.subf %134, %143 : vector<8x32xf32>
    %145 = arith.mulf %144, %144 : vector<8x32xf32>
    %cst_70 = arith.constant dense<0.000000e+00> : vector<8xf32>
    %146 = vector.multi_reduction <add>, %145, %cst_70 [1] : vector<8x32xf32> to vector<8xf32>
    %147 = vector.shape_cast %146 : vector<8xf32> to vector<8x1xf32>
    %cst_71 = arith.constant 3.200000e+01 : f32
    %148 = vector.broadcast %cst_71 : f32 to vector<8x1xf32>
    %149 = arith.divf %147, %148 : vector<8x1xf32>
    %150 = vector.broadcast %142 : vector<8x1xf32> to vector<8x32xf32>
    %151 = arith.subf %134, %150 : vector<8x32xf32>
    %cst_72 = arith.constant 9.99999996E-13 : f32
    %152 = vector.broadcast %cst_72 : f32 to vector<8x1xf32>
    %153 = arith.addf %149, %152 : vector<8x1xf32>
    %154 = math.rsqrt %153 : vector<8x1xf32>
    %155 = vector.broadcast %154 : vector<8x1xf32> to vector<8x32xf32>
    %156 = arith.mulf %151, %155 : vector<8x32xf32>
    %157 = vector.broadcast %136 : vector<1x32xf32> to vector<8x32xf32>
    %158 = arith.mulf %156, %157 : vector<8x32xf32>
    %159 = vector.broadcast %138 : vector<1x32xf32> to vector<8x32xf32>
    %160 = arith.addf %158, %159 : vector<8x32xf32>
    %161 = arith.truncf %160 : vector<8x32xf32> to vector<8x32xbf16>
    %c0_73 = arith.constant 0 : index
    %c0_74 = arith.constant 0 : index
    %c0_75 = arith.constant 0 : index
    %162 = vector.load %arg14[%c0_73, %c0_74, %c0_75] : memref<1x32x64xbf16, #tpu.memory_space<vmem>>, vector<1x32x64xbf16>
    %163 = vector.shape_cast %162 : vector<1x32x64xbf16> to vector<32x64xbf16>
    %cst_76 = arith.constant dense<0.000000e+00> : vector<8x64xf32>
    %164 = tpu.matmul %161, %163, %cst_76 {dimension_numbers = #tpu.dot_dimension_numbers<[1], [0], [0], [1], [0, 0, 1, 1], [], []>} : vector<8x32xbf16>, vector<32x64xbf16>, vector<8x64xf32> -> vector<8x64xf32>
    %c0_77 = arith.constant 0 : index
    %c0_78 = arith.constant 0 : index
    %c0_79 = arith.constant 0 : index
    %165 = vector.load %arg15[%c0_77, %c0_78, %c0_79] : memref<1x1x64xf32, #tpu.memory_space<vmem>>, vector<1x1x64xf32>
    %166 = vector.shape_cast %165 : vector<1x1x64xf32> to vector<1x64xf32>
    %167 = vector.broadcast %166 : vector<1x64xf32> to vector<8x64xf32>
    %168 = arith.addf %164, %167 : vector<8x64xf32>
    %169 = arith.mulf %168, %168 : vector<8x64xf32>
    %170 = arith.mulf %168, %169 : vector<8x64xf32>
    %cst_80 = arith.constant 4.471500e-02 : f32
    %171 = vector.broadcast %cst_80 : f32 to vector<8x64xf32>
    %172 = arith.mulf %171, %170 : vector<8x64xf32>
    %173 = arith.addf %168, %172 : vector<8x64xf32>
    %cst_81 = arith.constant 0.797884583 : f32
    %174 = vector.broadcast %cst_81 : f32 to vector<8x64xf32>
    %175 = arith.mulf %174, %173 : vector<8x64xf32>
    %176 = math.tanh %175 : vector<8x64xf32>
    %cst_82 = arith.constant 1.000000e+00 : f32
    %177 = vector.broadcast %cst_82 : f32 to vector<8x64xf32>
    %178 = arith.addf %177, %176 : vector<8x64xf32>
    %cst_83 = arith.constant 5.000000e-01 : f32
    %179 = vector.broadcast %cst_83 : f32 to vector<8x64xf32>
    %180 = arith.mulf %179, %178 : vector<8x64xf32>
    %181 = arith.mulf %168, %180 : vector<8x64xf32>
    %182 = arith.truncf %181 : vector<8x64xf32> to vector<8x64xbf16>
    %c0_84 = arith.constant 0 : index
    %c0_85 = arith.constant 0 : index
    %c0_86 = arith.constant 0 : index
    %183 = vector.load %arg16[%c0_84, %c0_85, %c0_86] : memref<1x64x32xbf16, #tpu.memory_space<vmem>>, vector<1x64x32xbf16>
    %184 = vector.shape_cast %183 : vector<1x64x32xbf16> to vector<64x32xbf16>
    %cst_87 = arith.constant dense<0.000000e+00> : vector<8x32xf32>
    %185 = tpu.matmul %182, %184, %cst_87 {dimension_numbers = #tpu.dot_dimension_numbers<[1], [0], [0], [1], [0, 0, 1, 1], [], []>} : vector<8x64xbf16>, vector<64x32xbf16>, vector<8x32xf32> -> vector<8x32xf32>
    %c0_88 = arith.constant 0 : index
    %c0_89 = arith.constant 0 : index
    %c0_90 = arith.constant 0 : index
    %186 = vector.load %arg17[%c0_88, %c0_89, %c0_90] : memref<1x1x32xf32, #tpu.memory_space<vmem>>, vector<1x1x32xf32>
    %187 = vector.shape_cast %186 : vector<1x1x32xf32> to vector<1x32xf32>
    %188 = vector.broadcast %187 : vector<1x32xf32> to vector<8x32xf32>
    %189 = arith.addf %185, %188 : vector<8x32xf32>
    %190 = arith.addf %189, %160 : vector<8x32xf32>
    %c0_91 = arith.constant 0 : index
    %c0_92 = arith.constant 0 : index
    %c0_93 = arith.constant 0 : index
    %191 = vector.load %arg18[%c0_91, %c0_92, %c0_93] : memref<1x1x32xf32, #tpu.memory_space<vmem>>, vector<1x1x32xf32>
    %192 = vector.shape_cast %191 : vector<1x1x32xf32> to vector<1x32xf32>
    %c0_94 = arith.constant 0 : index
    %c0_95 = arith.constant 0 : index
    %c0_96 = arith.constant 0 : index
    %193 = vector.load %arg19[%c0_94, %c0_95, %c0_96] : memref<1x1x32xf32, #tpu.memory_space<vmem>>, vector<1x1x32xf32>
    %194 = vector.shape_cast %193 : vector<1x1x32xf32> to vector<1x32xf32>
    %cst_97 = arith.constant dense<0.000000e+00> : vector<8xf32>
    %195 = vector.multi_reduction <add>, %190, %cst_97 [1] : vector<8x32xf32> to vector<8xf32>
    %196 = vector.shape_cast %195 : vector<8xf32> to vector<8x1xf32>
    %cst_98 = arith.constant 3.200000e+01 : f32
    %197 = vector.broadcast %cst_98 : f32 to vector<8x1xf32>
    %198 = arith.divf %196, %197 : vector<8x1xf32>
    %199 = vector.broadcast %198 : vector<8x1xf32> to vector<8x32xf32>
    %200 = arith.subf %190, %199 : vector<8x32xf32>
    %201 = arith.mulf %200, %200 : vector<8x32xf32>
    %cst_99 = arith.constant dense<0.000000e+00> : vector<8xf32>
    %202 = vector.multi_reduction <add>, %201, %cst_99 [1] : vector<8x32xf32> to vector<8xf32>
    %203 = vector.shape_cast %202 : vector<8xf32> to vector<8x1xf32>
    %cst_100 = arith.constant 3.200000e+01 : f32
    %204 = vector.broadcast %cst_100 : f32 to vector<8x1xf32>
    %205 = arith.divf %203, %204 : vector<8x1xf32>
    %206 = vector.broadcast %198 : vector<8x1xf32> to vector<8x32xf32>
    %207 = arith.subf %190, %206 : vector<8x32xf32>
    %cst_101 = arith.constant 9.99999996E-13 : f32
    %208 = vector.broadcast %cst_101 : f32 to vector<8x1xf32>
    %209 = arith.addf %205, %208 : vector<8x1xf32>
    %210 = math.rsqrt %209 : vector<8x1xf32>
    %211 = vector.broadcast %210 : vector<8x1xf32> to vector<8x32xf32>
    %212 = arith.mulf %207, %211 : vector<8x32xf32>
    %213 = vector.broadcast %192 : vector<1x32xf32> to vector<8x32xf32>
    %214 = arith.mulf %212, %213 : vector<8x32xf32>
    %215 = vector.broadcast %194 : vector<1x32xf32> to vector<8x32xf32>
    %216 = arith.addf %214, %215 : vector<8x32xf32>
    %c0_102 = arith.constant 0 : index
    %c0_103 = arith.constant 0 : index
    %217 = vector.load %arg21[%c0_102, %c0_103] : memref<8x32xf32, #tpu.memory_space<vmem>>, vector<8x32xf32>
    tpu.vector_store %arg21[%c0_102, %c0_103], %216 {strides = array<i32>} : memref<8x32xf32, #tpu.memory_space<vmem>>, vector<8x32xf32>,
    %c1_i32 = arith.constant 1 : i32
    %218 = arith.cmpi eq, %arg1, %c1_i32 : i32
    %219 = arith.extui %218 : i1 to i32
    %c0_i32_104 = arith.constant 0 : i32
    %220 = arith.cmpi ne, %219, %c0_i32_104 : i32
    scf.if %220 {
      %c0_105 = arith.constant 0 : index
      %c0_106 = arith.constant 0 : index
      %c0_107 = arith.constant 0 : index
      %221 = vector.load %arg20[%c0_105, %c0_106, %c0_107] : memref<1x8x32xf32, #tpu.memory_space<vmem>>, vector<1x8x32xf32>
      %222 = vector.shape_cast %221 : vector<1x8x32xf32> to vector<8x32xf32>
      %223 = vector.shape_cast %216 : vector<8x32xf32> to vector<1x8x32xf32>
      tpu.vector_store %arg20[%c0_105, %c0_106, %c0_107], %223 {strides = array<i32>} : memref<1x8x32xf32, #tpu.memory_space<vmem>>, vector<1x8x32xf32>,
    } else {
    }
    return
  }
  func.func @transform_0(%arg0: i32, %arg1: i32) -> (i32, i32, i32) {
    %c0_i32 = arith.constant 0 : i32
    %c0_i32_0 = arith.constant 0 : i32
    %c0_i32_1 = arith.constant 0 : i32
    return %arg0, %c0_i32, %c0_i32_0 : i32, i32, i32
  }
  func.func @transform_1(%arg0: i32, %arg1: i32) -> (i32, i32, i32, i32) {
    %c0_i32 = arith.constant 0 : i32
    %c0_i32_0 = arith.constant 0 : i32
    %c0_i32_1 = arith.constant 0 : i32
    %c0_i32_2 = arith.constant 0 : i32
    return %arg0, %c0_i32, %c0_i32_0, %c0_i32_1 : i32, i32, i32, i32
  }
  func.func @transform_2(%arg0: i32, %arg1: i32) -> (i32, i32, i32) {
    %c0_i32 = arith.constant 0 : i32
    %c0_i32_0 = arith.constant 0 : i32
    %c0_i32_1 = arith.constant 0 : i32
    return %arg1, %c0_i32, %c0_i32_0 : i32, i32, i32
  }
  func.func @transform_3(%arg0: i32, %arg1: i32) -> (i32, i32, i32) {
    %c0_i32 = arith.constant 0 : i32
    %c0_i32_0 = arith.constant 0 : i32
    %c0_i32_1 = arith.constant 0 : i32
    return %arg1, %c0_i32, %c0_i32_0 : i32, i32, i32
  }
  func.func @transform_4(%arg0: i32, %arg1: i32) -> (i32, i32, i32) {
    %c0_i32 = arith.constant 0 : i32
    %c0_i32_0 = arith.constant 0 : i32
    %c0_i32_1 = arith.constant 0 : i32
    return %arg1, %c0_i32, %c0_i32_0 : i32, i32, i32
  }
  func.func @transform_5(%arg0: i32, %arg1: i32) -> (i32, i32, i32) {
    %c0_i32 = arith.constant 0 : i32
    %c0_i32_0 = arith.constant 0 : i32
    %c0_i32_1 = arith.constant 0 : i32
    return %arg1, %c0_i32, %c0_i32_0 : i32, i32, i32
  }
  func.func @transform_6(%arg0: i32, %arg1: i32) -> (i32, i32, i32) {
    %c0_i32 = arith.constant 0 : i32
    %c0_i32_0 = arith.constant 0 : i32
    %c0_i32_1 = arith.constant 0 : i32
    return %arg1, %c0_i32, %c0_i32_0 : i32, i32, i32
  }
  func.func @transform_7(%arg0: i32, %arg1: i32) -> (i32, i32, i32) {
    %c0_i32 = arith.constant 0 : i32
    %c0_i32_0 = arith.constant 0 : i32
    %c0_i32_1 = arith.constant 0 : i32
    return %arg1, %c0_i32, %c0_i32_0 : i32, i32, i32
  }
  func.func @transform_8(%arg0: i32, %arg1: i32) -> (i32, i32, i32) {
    %c0_i32 = arith.constant 0 : i32
    %c0_i32_0 = arith.constant 0 : i32
    %c0_i32_1 = arith.constant 0 : i32
    return %arg1, %c0_i32, %c0_i32_0 : i32, i32, i32
  }
  func.func @transform_9(%arg0: i32, %arg1: i32) -> (i32, i32, i32) {
    %c0_i32 = arith.constant 0 : i32
    %c0_i32_0 = arith.constant 0 : i32
    %c0_i32_1 = arith.constant 0 : i32
    return %arg1, %c0_i32, %c0_i32_0 : i32, i32, i32
  }
  func.func @transform_10(%arg0: i32, %arg1: i32) -> (i32, i32, i32) {
    %c0_i32 = arith.constant 0 : i32
    %c0_i32_0 = arith.constant 0 : i32
    %c0_i32_1 = arith.constant 0 : i32
    return %arg1, %c0_i32, %c0_i32_0 : i32, i32, i32
  }
  func.func @transform_11(%arg0: i32, %arg1: i32) -> (i32, i32, i32) {
    %c0_i32 = arith.constant 0 : i32
    %c0_i32_0 = arith.constant 0 : i32
    %c0_i32_1 = arith.constant 0 : i32
    return %arg1, %c0_i32, %c0_i32_0 : i32, i32, i32
  }
  func.func @transform_12(%arg0: i32, %arg1: i32) -> (i32, i32, i32) {
    %c0_i32 = arith.constant 0 : i32
    %c0_i32_0 = arith.constant 0 : i32
    %c0_i32_1 = arith.constant 0 : i32
    return %arg1, %c0_i32, %c0_i32_0 : i32, i32, i32
  }
  func.func @transform_13(%arg0: i32, %arg1: i32) -> (i32, i32, i32) {
    %c0_i32 = arith.constant 0 : i32
    %c0_i32_0 = arith.constant 0 : i32
    %c0_i32_1 = arith.constant 0 : i32
    return %arg1, %c0_i32, %c0_i32_0 : i32, i32, i32
  }
  func.func @transform_14(%arg0: i32, %arg1: i32) -> (i32, i32, i32) {
    %c0_i32 = arith.constant 0 : i32
    %c0_i32_0 = arith.constant 0 : i32
    %c0_i32_1 = arith.constant 0 : i32
    return %arg1, %c0_i32, %c0_i32_0 : i32, i32, i32
  }
  func.func @transform_15(%arg0: i32, %arg1: i32) -> (i32, i32, i32) {
    %c0_i32 = arith.constant 0 : i32
    %c0_i32_0 = arith.constant 0 : i32
    %c0_i32_1 = arith.constant 0 : i32
    return %arg1, %c0_i32, %c0_i32_0 : i32, i32, i32
  }
  func.func @transform_16(%arg0: i32, %arg1: i32) -> (i32, i32, i32) {
    %c0_i32 = arith.constant 0 : i32
    %c0_i32_0 = arith.constant 0 : i32
    %c0_i32_1 = arith.constant 0 : i32
    return %arg1, %c0_i32, %c0_i32_0 : i32, i32, i32
  }
  func.func @transform_17(%arg0: i32, %arg1: i32) -> (i32, i32, i32) {
    %c0_i32 = arith.constant 0 : i32
    %c0_i32_0 = arith.constant 0 : i32
    %c0_i32_1 = arith.constant 0 : i32
    return %arg1, %c0_i32, %c0_i32_0 : i32, i32, i32
  }
  func.func @transform_18(%arg0: i32, %arg1: i32) -> (i32, i32, i32) {
    %c0_i32 = arith.constant 0 : i32
    %c0_i32_0 = arith.constant 0 : i32
    %c0_i32_1 = arith.constant 0 : i32
    return %arg0, %c0_i32, %c0_i32_0 : i32, i32, i32
  }
}

</mosaic_0001>

<bundles_post_ra>
// kernel: tpu_custom_call.1
= control target key start
LH: loop header
LB: loop body
LE: loop exit
PB: predicated region body
PF: predicated region fallthrough
CT: control target
= control target key end

     0   :  { %s3640_s0 = inlined_call_operand.hbm [shape: f32[2,8,32], index: 0, kind: input, shape index: {}]   ;;  %s3641_s1 = inlined_call_operand.vmem [shape: f32[2,1,1,8], index: 1, kind: input, shape index: {}]   ;;  %s3642_s2 = inlined_call_operand.vmem [shape: bf16[2,32,32], index: 2, kind: input, shape index: {}]   ;;  %s3643_s3 = inlined_call_operand.vmem [shape: f32[2,1,32], index: 3, kind: input, shape index: {}]   ;;  %s3644_s4 = inlined_call_operand.vmem [shape: bf16[2,32,32], index: 4, kind: input, shape index: {}]   ;;  %s3645_s5 = inlined_call_operand.vmem [shape: f32[2,1,32], index: 5, kind: input, shape index: {}]   ;;  %s3646_s6 = inlined_call_operand.vmem [shape: bf16[2,32,32], index: 6, kind: input, shape index: {}]   ;;  %s3647_s7 = inlined_call_operand.vmem [shape: f32[2,1,32], index: 7, kind: input, shape index: {}]   ;;  %s3648_s8 = inlined_call_operand.hbm [shape: bf16[2,32,32], index: 8, kind: input, shape index: {}]   ;;  %s3649_s9 = inlined_call_operand.vmem [shape: f32[2,1,32], index: 9, kind: input, shape index: {}]   ;;  %s3650_s10 = inlined_call_operand.vmem [shape: f32[2,1,32], index: 10, kind: input, shape index: {}]   ;;  %s3651_s11 = inlined_call_operand.vmem [shape: f32[2,1,32], index: 11, kind: input, shape index: {}]   ;;  %s3652_s12 = inlined_call_operand.hbm [shape: bf16[2,32,64], index: 12, kind: input, shape index: {}]   ;;  %s3653_s13 = inlined_call_operand.vmem [shape: f32[2,1,64], index: 13, kind: input, shape index: {}]   ;;  %s3654_s14 = inlined_call_operand.vmem [shape: bf16[2,64,32], index: 14, kind: input, shape index: {}]   ;;  %s3655_s15 = inlined_call_operand.vmem [shape: f32[2,1,32], index: 15, kind: input, shape index: {}]   ;;  %s3656_s16 = inlined_call_operand.vmem [shape: f32[2,1,32], index: 16, kind: input, shape index: {}]   ;;  %s3657_s17 = inlined_call_operand.vmem [shape: f32[2,1,32], index: 17, kind: input, shape index: {}]   ;;  %s3658_s18 = inlined_call_operand.hbm [shape: f32[2,8,32], index: 18, kind: output, shape index: {}]  }
   0x1   :  { %3688 = sst [smem:[#allocation29_spill]] %s3640_s0 }
   0x2   :  { %3689 = sst [smem:[#allocation30_spill]] %s3641_s1 }
   0x3   :  { %3690 = sst [smem:[#allocation31_spill]] %s3642_s2 }
   0x4   :  { %3691 = sst [smem:[#allocation32_spill]] %s3643_s3 }
   0x5   :  { %3692 = sst [smem:[#allocation33_spill]] %s3644_s4 }
   0x6   :  { %3693 = sst [smem:[#allocation34_spill]] %s3645_s5 }
   0x7   :  { %3694 = sst [smem:[#allocation35_spill]] %s3646_s6 }
   0x8   :  { %3695 = sst [smem:[#allocation36_spill]] %s3647_s7 }
   0x9   :  { %3696 = sst [smem:[#allocation37_spill]] %s3648_s8 }
   0xa   :  { %3697 = sst [smem:[#allocation38_spill]] %s3649_s9 }
   0xb   :  { %3698 = sst [smem:[#allocation39_spill]] %s3650_s10 }
   0xc   :  { %3699 = sst [smem:[#allocation40_spill]] %s3651_s11 }
   0xd   :  { %3700 = sst [smem:[#allocation41_spill]] %s3652_s12 }
   0xe   :  { %3701 = sst [smem:[#allocation42_spill]] %s3653_s13 }
   0xf   :  { %3702 = sst [smem:[#allocation43_spill]] %s3654_s14 }
  0x10   :  { %3703 = sst [smem:[#allocation44_spill]] %s3655_s15 }
  0x11   :  { %3704 = sst [smem:[#allocation45_spill]] %s3656_s16 }
  0x12   :  { %3705 = sst [smem:[#allocation46_spill]] %s3657_s17 }
  0x13   :  { %3706 = sst [smem:[#allocation47_spill]] %s3658_s18 }
  0x14   :  { %23 = vsyncpa [#allocation4], 0 }
  0x15   :  { %25 = vsyncpa [#allocation4 + $0x1], 0 }
  0x16   :  { %26 = vsyncpa [#allocation7], 0 }
  0x17   :  { %28 = vsyncpa [#allocation7 + $0x1], 0 }
  0x18   :  { %29 = vsyncpa [#allocation5], 0 }
  0x19   :  { %31 = vsyncpa [#allocation5 + $0x1], 0  ;;  %s2994_s27 = smov 0   ;;  %s2996_s28 = smov 0  }
  0x1a   :  { %s2998_s29 = smov 0   ;;  %s3000_s30 = smov 0  }
  0x1b   :  { %s3002_s0 = smov 0   ;;  %s3004_s19 = smov 0  }
  0x1c   :  { %s3006_s1 = smov 0   ;;  %s3008_s20 = smov 0  }
  0x1d   :  { %s3010_s21 = smov 0   ;;  %s3012_s22 = smov 0  }
  0x1e   :  { %s3014_s2 = smov 0  }
  0x1f LB: > { %3707 = sst [smem:[#allocation13_spill]] %s2850_s28  ;;  %s46_s23 = sadd.s32 1, %s2878_s21  ;;  %s2886_s2 = sphi %s3014_s2, %s37_s2   ;;  %s2882_s22 = sphi %s3012_s22, %s3796_s22   ;;  %s2878_s21 = sphi %s3010_s21, %s3795_s21   ;;  %s2874_s20 = sphi %s3008_s20, %s3794_s20   ;;  %s2870_s1 = sphi %s3006_s1, %s3793_s1   ;;  %s2866_s19 = sphi %s3004_s19, %s3792_s19   ;;  %s2862_s0 = sphi %s3002_s0, %s3791_s0   ;;  %s2858_s30 = sphi %s3000_s30, %s3790_s30   ;;  %s2854_s29 = sphi %s2998_s29, %s3789_s29   ;;  %s2850_s28 = sphi %s2996_s28, %s3788_s28   ;;  %s2846_s27 = sphi %s2994_s27, %s3787_s27  }
  0x20   : > { %3708 = sst [smem:[#allocation14_spill]] %s2854_s29  ;;  %p3665_p0 = scmp.eq.s32.totalorder %s2886_s2, 0 }
  0x21   : > { %3709 = sst [smem:[#allocation15_spill]] %s2858_s30  ;;  %p3051_p1 = scmp.ge.s32.totalorder %s46_s23, 2 }
  0x22   : > { %3710 = sst [smem:[#allocation16_spill]] %s2862_s0  ;;  %s264_s25 = sadd.s32 1, %s2854_s29 }
  0x23   : > { %3711 = sst [smem:[#allocation17_spill]] %s2866_s19  ;;  %p271_p2 = scmp.ne.s32.totalorder %s2854_s29, %s2850_s28 }
  0x24   : > { %3712 = sst [smem:[#allocation18_spill]] %s2874_s20  ;;  %s3798_s23 = smov (%p3051_p1, %s46_s23), 0 }
  0x25   : > { %3713 = sst [smem:[#allocation19_spill]] %s2878_s21  ;;  %p273_p3 = por %p271_p2, %p3665_p0 }
  0x26   : > { %3714 = sst [smem:[#allocation20_spill]] %s2882_s22  ;;  %s261_s26 = ssub.s32 %s2878_s21, %s3798_s23 }
  0x27   : > { %3715 = sst [smem:[#allocation21_spill]] %s2886_s2  ;;  %p3664_p4 = scmp.lt.s32.totalorder %s2886_s2, 4 }
  0x28   : > { %3717 = sst [smem:[#allocation22_spill]] %s3798_s23  ;;  %p262_p5 = scmp.eq.s32.totalorder %s261_s26, 0 }
  0x29   : > { %s627_s18 = sand.u32 1, %s2886_s2   ;;  %s629_s17 = sand.u32 1, %s2854_s29  }
  0x2a   : > { %s3070_s16 = scalar_select %p262_p5, %s2854_s29, %s264_s25  }
  0x2b   : > { %s3072_s15 = sshll.u32 %s629_s17, 4  ;;  %s3662_s14 = sshll.u32 %s2878_s21, 8 }
  0x2c   : > { %3718 = sst [smem:[#allocation23_spill]] %s3070_s16  ;;  %s3719_s8 = sld [smem:[#allocation37_spill]] }
  0x2d   : > { %s631_s23 = scalar_lea.vmem [#allocation6], %s3072_s15  ;;  %p3085_p6 = pnand %p3664_p4, %p273_p3 }
  0x2e   : > { %s638_s26 = sshll.u32 %s631_s23, 4  ;;  %s3091_s17 = scalar_lea.sflag [#allocation7], %s627_s18  ;;  %s3089_s26 = int_to_ptr.vmem [resolvable:$true] %s638_s26 }
  0x2f   : > { %p3666_p8 = pneg %p3085_p6 }
  0x32   : > { %s3080_s10 = scalar_lea.hbm %s3719_s8, %s3662_s14  ;;  %s2675_s14 = scalar_lea.hbm %s3719_s8, 512 }
  0x33   : > { %s2670_s11 = scalar_lea.hbm %s3080_s10, 256  ;;  %p2676_p11 = scmp.lt.u32.totalorder %s3080_s10, %s3719_s8 }
  0x34   : > { %p2671_p7 = scmp.ne.s32.totalorder %s3080_s10, %s2670_s11  ;;  %p2677_p12 = scmp.lt.u32.totalorder %s2675_s14, %s2670_s11 }
  0x35   : > { %p2679_p2 = scmp.lt.u32.totalorder %s2670_s11, %s3080_s10 }
  0x36   : > { %p2673_p9 = pnand %p3666_p8, %p2671_p7  ;;  %p2678_p13 = por %p2677_p12, %p2676_p11 }
  0x38   : > { %p2674_p10 = pneg %p2673_p9  ;;  %p2680_p3 = por %p2679_p2, %p2678_p13 }
  0x3a   : > { %p2681_p5 = pnand %p2680_p3, %p2674_p10 }
  0x3c   : > { %2684 = shalt.err (!%p2681_p5)
}
  0x3d   : > { %s2685_s18 = scalar_lea.vmem %s3089_s26, 256  ;;  %s2888_s13 = smov [#allocation6]  }
  0x3e   : > { %p2686_p7 = scmp.ne.s32.totalorder %s3089_s26, %s2685_s18  ;;  %s2690_s23 = sshll.u32 %s2888_s13, 4  ;;  %s2691_s23 = int_to_ptr.vmem [resolvable:$false] %s2690_s23 }
  0x3f   : > { %s2692_s16 = scalar_lea.vmem %s2691_s23, 512  ;;  %p2693_p0 = scmp.lt.s32.totalorder %s3089_s26, %s2691_s23 }
  0x40   : > { %p2688_p9 = pnand %p2686_p7, %p3666_p8  ;;  %p2694_p11 = scmp.lt.s32.totalorder %s2692_s16, %s2685_s18 }
  0x42   : > { %p2689_p4 = pneg %p2688_p9  ;;  %p2695_p12 = por %p2694_p11, %p2693_p0 }
  0x44   : > { %p2696_p13 = pnand %p2695_p12, %p2689_p4 }
  0x46   : > { %2699 = shalt.err (!%p2696_p13)
}
  0x47   : > { %s3667_s14 = smov 64   ;;  %s3668_s29 = smov 4  }
  0x48   : > { %2531 = dma.hbm_to_vmem [thread:$0]  (!%p3085_p6), %s3080_s10, 256, %s3089_s26, %s3091_s17, %s3667_s14, %s3667_s14, %s3668_s29  }
  0x49   : > { %p277_p0 = scmp.ne.s32.totalorder %s2850_s28, %s2846_s27  ;;  %s3721_s11 = sshll.u32 %s2878_s21, 8 }
  0x4a   : > { %s3722_s12 = sld [smem:[#allocation41_spill]]  ;;  %p2295_p4 = scmp.ge.s32.totalorder %s2886_s2, 1 }
  0x4b   : > { %s670_s16 = scalar_lea.vmem [#allocation8], %s3072_s15  ;;  %p717_p10 = scmp.lt.s32.totalorder %s2886_s2, 5 }
  0x4c   : > { %s677_s8 = sshll.u32 %s670_s16, 4  ;;  %s3139_s10 = sadd.s32 4294967295, %s2886_s2   ;;  %s3206_s8 = int_to_ptr.vmem [resolvable:$true] %s677_s8 }
  0x4d   : > { %p3134_p2 = pnand %p2295_p4, %p717_p10  ;;  %s2284_s26 = sadd.s32 4294967294, %s2886_s2  }
  0x4e   : > { %s56_s15 = sadd.s32 1, %s2866_s19  ;;  %p63_p3 = scmp.ne.s32.totalorder %s2866_s19, %s2862_s0 }
  0x4f   : > { %s3723_s9 = scalar_select %p3134_p2, 1, 0 }
  0x50   : > { %s3129_s23 = scalar_lea.hbm %s3722_s12, %s3721_s11  ;;  %s49_s11 = sadd.s32 1, %s2882_s22 }
  0x51   : > { %s3800_s11 = smov (!%p3051_p1, %s49_s11), %s2882_s22  ;;  %p69_p7 = scmp.ne.s32.totalorder %s2862_s0, %s2858_s30 }
  0x52   : > { %p51_p5 = scmp.ge.s32.totalorder %s3800_s11, 2  ;;  %p3724_p9 = scmp.eq.s32.totalorder %s2886_s2, 0 }
  0x53   : > { %p70_p12 = scmp.eq.s32.totalorder %s3139_s10, 0  ;;  %p535_p4 = scmp.eq.s32.totalorder %s3139_s10, 3 }
  0x54   : > { %p3153_p11 = por %p3724_p9, %p63_p3  ;;  %s3802_s11 = smov (%p51_p5, %s3800_s11), 0 }
  0x55   : > { %3726 = sst [smem:[#allocation24_spill]] %s3802_s11  ;;  %p3163_p1 = por %p70_p12, %p69_p7 }
  0x56   : > { %p3170_p13 = por %p277_p0, %p70_p12  ;;  %s53_s16 = ssub.s32 %s2882_s22, %s3802_s11 }
  0x57   : > { %s3727_s24 = scalar_select %p3163_p1, 1, 0 }
  0x58   : > { %s3728_s13 = scalar_select %p3170_p13, 1, 0 }
  0x59   : > { %p54_p10 = scmp.eq.s32.totalorder %s53_s16, 0  ;;  %p541_p9 = scmp.eq.s32.totalorder %s2284_s26, 3 }
  0x5a   : > { %p3177_p8 = por %p535_p4, %p63_p3  ;;  %s561_s29 = sand.u32 1, %s2866_s19  }
  0x5b   : > { %s3183_s21 = scalar_select %p54_p10, %s2866_s19, %s56_s15  }
  0x5c   : > { %s3729_s14 = scalar_select %p3177_p8, 1, 0 }
  0x5d   : > { %3731 = sst [smem:[#allocation26_spill]] %s3183_s21  ;;  %p3188_p5 = por %p541_p9, %p69_p7 }
  0x5e   : > { %3730 = sst [smem:[#allocation25_spill]] %s3729_s14  ;;  %s2287_s27 = sshll.u32 %s561_s29, 3 }
  0x5f   : > { %s3732_s7 = scalar_select %p3188_p5, 1, 0 }
  0x60   : > { %s2288_s6 = sshll.u32 %s2882_s22, 7  ;;  %s3734_s11 = sld [smem:[#allocation29_spill]] }
  0x61   : > { %3733 = sst [smem:[#allocation27_spill]] %s3732_s7  ;;  %s565_s26 = scalar_lea.vmem [#allocation3], %s2287_s27 }
  0x62   : > { %s572_s16 = sshll.u32 %s565_s26, 4  ;;  %p3735_p0 = scmp.lt.s32.totalorder %s2886_s2, 4  ;;  %s3208_s16 = int_to_ptr.vmem [resolvable:$true] %s572_s16 }
  0x63   : > { %s562_s4 = scalar_lea.sflag [#allocation4], %s561_s29 }
  0x64   : > { %p3202_p3 = pnand %p3735_p0, %p3153_p11 }
  0x66   : > { %s3196_s3 = scalar_lea.hbm %s3734_s11, %s2288_s6  ;;  %p2702_p12 = pneg %p3202_p3 }
  0x67   : > { %s2700_s5 = scalar_lea.hbm %s3196_s3, 128  ;;  %s2705_s27 = scalar_lea.hbm %s3734_s11, 256 }
  0x68   : > { %p2701_p7 = scmp.ne.s32.totalorder %s3196_s3, %s2700_s5  ;;  %p2706_p11 = scmp.lt.u32.totalorder %s3196_s3, %s3734_s11 }
  0x69   : > { %p2707_p9 = scmp.lt.u32.totalorder %s2705_s27, %s2700_s5  ;;  %p2709_p5 = scmp.lt.u32.totalorder %s2700_s5, %s3196_s3 }
  0x6a   : > { %p2703_p4 = pnand %p2702_p12, %p2701_p7 }
  0x6b   : > { %p2708_p0 = por %p2707_p9, %p2706_p11 }
  0x6c   : > { %p2704_p10 = pneg %p2703_p4 }
  0x6d   : > { %p2710_p8 = por %p2709_p5, %p2708_p0 }
  0x6f   : > { %p2711_p13 = pnand %p2710_p8, %p2704_p10 }
  0x71   : > { %2714 = shalt.err (!%p2711_p13)
}
  0x72   : > { %s2715_s29 = scalar_lea.vmem %s3208_s16, 128  ;;  %s2891_s6 = smov [#allocation3]  }
  0x73   : > { %p2716_p7 = scmp.ne.s32.totalorder %s3208_s16, %s2715_s29  ;;  %s2720_s18 = sshll.u32 %s2891_s6, 4  ;;  %s2721_s18 = int_to_ptr.vmem [resolvable:$false] %s2720_s18 }
  0x74   : > { %s2722_s22 = scalar_lea.vmem %s2721_s18, 256  ;;  %p2723_p2 = scmp.lt.s32.totalorder %s3208_s16, %s2721_s18 }
  0x75   : > { %p2718_p4 = pnand %p2716_p7, %p2702_p12  ;;  %p2724_p11 = scmp.lt.s32.totalorder %s2722_s22, %s2715_s29 }
  0x77   : > { %p2719_p1 = pneg %p2718_p4  ;;  %p2725_p9 = por %p2724_p11, %p2723_p2 }
  0x79   : > { %p2726_p5 = pnand %p2725_p9, %p2719_p1 }
  0x7b   : > { %2729 = shalt.err (!%p2726_p5)
}
  0x7c   : > { %2528 = dma.hbm_to_vmem [thread:$0]  (!%p3202_p3), %s3196_s3, 128, %s3208_s16, %s562_s4  }
  0x7d   : > { %s2730_s5 = scalar_lea.hbm %s3129_s23, 256  ;;  %p3737_p13 = pneg %p3085_p6 }
  0x7e   : > { %p2731_p8 = scmp.ne.s32.totalorder %s3129_s23, %s2730_s5  ;;  %s2735_s29 = scalar_lea.hbm %s3722_s12, 512 }
  0x7f   : > { %p2736_p2 = scmp.lt.u32.totalorder %s3129_s23, %s3722_s12  ;;  %p2737_p1 = scmp.lt.u32.totalorder %s2735_s29, %s2730_s5 }
  0x80   : > { %p2733_p12 = pnand %p2731_p8, %p3737_p13  ;;  %p2739_p7 = scmp.lt.u32.totalorder %s2730_s5, %s3129_s23 }
  0x81   : > { %p2738_p0 = por %p2737_p1, %p2736_p2 }
  0x82   : > { %p2734_p10 = pneg %p2733_p12 }
  0x83   : > { %p2740_p4 = por %p2739_p7, %p2738_p0 }
  0x85   : > { %p2741_p11 = pnand %p2740_p4, %p2734_p10 }
  0x87   : > { %2744 = shalt.err (!%p2741_p11)
}
  0x88   : > { %s2745_s3 = scalar_lea.vmem %s3206_s8, 256  ;;  %p3738_p9 = pmov %p3737_p13 }
  0x89   : > { %p2746_p3 = scmp.ne.s32.totalorder %s3206_s8, %s2745_s3  ;;  %s2892_s16 = smov [#allocation8]  }
  0x8a   : > { %s2750_s4 = sshll.u32 %s2892_s16, 4  ;;  %s2751_s4 = int_to_ptr.vmem [resolvable:$false] %s2750_s4 }
  0x8b   : > { %p2748_p5 = pnand %p2746_p3, %p3738_p9  ;;  %s2752_s18 = scalar_lea.vmem %s2751_s4, 512 }
  0x8c   : > { %p2753_p13 = scmp.lt.s32.totalorder %s3206_s8, %s2751_s4  ;;  %p2754_p12 = scmp.lt.s32.totalorder %s2752_s18, %s2745_s3 }
  0x8d   : > { %p2749_p8 = pneg %p2748_p5 }
  0x8e   : > { %p2755_p2 = por %p2754_p12, %p2753_p13 }
  0x90   : > { %p2756_p1 = pnand %p2755_p2, %p2749_p8 }
  0x92   : > { %2759 = shalt.err (!%p2756_p1)
}
  0x93   : > { %s3739_s22 = smov 4   ;;  %s3740_s5 = smov 64  }
  0x94   : > { %2534 = dma.hbm_to_vmem [thread:$0]  (!%p3085_p6), %s3129_s23, 256, %s3206_s8, %s3091_s17, %s3740_s5, %s3740_s5, %s3739_s22  }
  0x95   : > { %p3741_p10 = scmp.ne.s32.totalorder %s3723_s9, 0 }
  0x97   : > { %721 = sbr.rel (%p3741_p10) target bundleno = 3910 (0xf46), region = 92 }
  0x9e   : > { %s3265_s27 = sand.u32 1, %s2862_s0   ;;  %p3742_p0 = scmp.ne.s32.totalorder %s3727_s24, 0 }
  0x9f   : > { %s3675_s26 = sshll.u32 %s3265_s27, 3  ;;  %s724_s29 = scalar_lea.sflag [#allocation4], %s3265_s27 }
  0xa0   : > { %s3271_s25 = scalar_lea.vmem [#allocation3], %s3675_s26 }
  0xa1   : > { %2833 = dma.done.wait (%p3742_p0), %s724_s29, 128  }
  0xa2   : > { %2835 = vsyncadd (%p3742_p0), %s724_s29, 4294967168  ;;  %s732_s8 = sand.u32 1, %s3139_s10   ;;  %s734_s9 = sand.u32 1, %s2850_s28  }
  0xa3   : > { %s3279_s17 = sshll.u32 %s734_s9, 4  ;;  %s733_s23 = scalar_lea.sflag [#allocation7], %s732_s8 }
  0xa4   : > { %s3282_s6 = scalar_lea.vmem [#allocation6], %s3279_s17  ;;  %p3744_p6 = scmp.ne.s32.totalorder %s3728_s13, 0 }
  0xa5   : > { %3743 = sst [smem:[#allocation28_spill]] %s3282_s6 }
  0xa6   : > { %2837 = dma.done.wait (%p3744_p6), %s733_s23, 512  }
  0xa7   : > { %2839 = vsyncadd (%p3744_p6), %s733_s23, 4294966784  ;;  %p861_p7 = scmp.lt.s32.totalorder %s2874_s20, 1  ;;  %p864_p4 = scmp.lt.s32.totalorder %s2870_s1, 1 }
  0xa8   : > { %s3747_s23 = sld [smem:[#allocation31_spill]]  ;;  %s3748_s11 = sld [smem:[#allocation33_spill]] }
  0xa9   : > { %s3291_s24 = scalar_select %p861_p7, %s2874_s20, 1 }
  0xaa   : > { %s3294_s10 = scalar_select %p864_p4, %s2870_s1, 1 }
  0xab   : > { %s3750_s7 = sld [smem:[#allocation35_spill]]  ;;  %s3751_s29 = sld [smem:[#allocation36_spill]] }
  0xac   : > { %s2356_s4 = sshll.u32 %s3294_s10, 4  ;;  %s3758_s3 = sld [smem:[#allocation45_spill]] }
  0xad   : > { %s3759_s21 = sld [smem:[#allocation46_spill]]  ;;  %s745_s13 = scalar_lea.vmem [#allocation8], %s3279_s17 }
  0xae   : > { %s868_s15 = scalar_lea.vmem %s3747_s23, %s2356_s4  ;;  %s3311_s12 = scalar_lea.vmem %s3748_s11, %s2356_s4 }
  0xaf   : > { %s3757_s23 = sld [smem:[#allocation44_spill]]  ;;  %s3760_s28 = sshll.u32 %s3265_s27, 3 }
  0xb0   : > { %p2308_p11 = scmp.ne.s32.totalorder %s2870_s1, 0 }
  0xb1   : > { %s3320_s18 = scalar_lea.vmem %s3750_s7, %s2356_s4  ;;  %s887_s8 = scalar_lea.vmem %s3751_s29, %s3294_s10  ;;  %v919_v0 = vld [vmem:[%s3271_s25] sm:$0xff] (!%p2308_p11)  ;;  %vm920_vm0 = vcmask (!%p2308_p11), 261120  }
  0xb2   : > { %s3755_s7 = sld [smem:[#allocation42_spill]]  ;;  %s2359_s4 = sshll.u32 %s3294_s10, 5  ;;  %921 = vst.msk [vmem:[#allocation2] sm:$0xff] (!%p2308_p11), %vm920_vm0, %v919_v0 }
  0xb3   : > { %s3756_s29 = sld [smem:[#allocation43_spill]]  ;;  %s910_s14 = scalar_lea.vmem %s3758_s3, %s3294_s10 }
  0xb4   : > { %s913_s16 = scalar_lea.vmem %s3759_s21, %s3294_s10  ;;  %918 = sbr.rel (%p2308_p11) target bundleno = 187 (0xbb), region = 108 }
  0xb5   : > { %s907_s2 = scalar_lea.vmem %s3757_s23, %s3294_s10 }
  0xb8   : > { %s899_s0 = scalar_lea.vmem %s3755_s7, %s3294_s10  ;;  %s3363_s7 = scalar_lea.vmem [#allocation9], %s3760_s28 }
  0xb9   : > { %s3346_s5 = scalar_lea.vmem %s3756_s29, %s2359_s4 }
  0xbb PF: > { %v2636_v1 = vld [vmem:[%s868_s15] sm:$0xff]   ;;  %v2893_v2 = vmov 0.0   ;;  %v2637_v3 = vld [vmem:[%s868_s15 + $0x8] sm:$0xff]   ;;  %vm2894_vm1 = vmmov 0   ;;  %vm950_vm2 = vcmask 261120   ;;  %s3763_s29 = sld [smem:[#allocation34_spill]]  ;;  %v1125_v29 = vlaneseq }
  0xbc   : > { %2401 = vmatprep.subr.bf16.mxu1 %v2893_v2  ;;  %2417 = vmatprep.subr.bf16.mxu0 %v2893_v2  ;;  %v3371_v4 = vld [vmem:[#allocation2] sm:$0xff]  ;;  %v2639_v7 = vld [vmem:[%s3311_s12 + $0x8] sm:$0xff]   ;;  %vm1130_vm3 = vcmask 64512   ;;  %s2895_s30 = smov 120   ;;  %s3765_s26 = sld [smem:[#allocation30_spill]]  ;;  %vm1192_vm4 = vcmask 1043456  }
  0xbd   : > { %2402 = vmatpush3.bf16.msra.mxu1 %v2636_v1  ;;  %2405 = vmatprep.mubr.msk.bf16.mxu1 %vm2894_vm1, %v2893_v2  ;;  %v2638_v5 = vld [vmem:[%s3311_s12] sm:$0xff]   ;;  %v926_v6 = vpack.c.bf16 %v3371_v4, %v3371_v4  ;;  %s3761_s12 = sld [smem:[#allocation32_spill]]  ;;  %v2641_v25 = vld [vmem:[%s3320_s18 + $0x8] sm:$0xff]   ;;  %v1126_v32 = vshrl.u32 %v1125_v29, 7  ;;  %s2896_s19 = smov 112   ;;  %vm1918_vm5 = vcmask 523264  }
  0xbe   : > { %2403 = vmatprep.subr.bf16.mxu1 %v2893_v2  ;;  %2421 = vmatprep.mubr.msk.bf16.mxu0 %vm2894_vm1, %v2893_v2  ;;  %v2640_v24 = vld [vmem:[%s3320_s18] sm:$0xff]   ;;  %s3768_s21 = sld [smem:[#allocation28_spill]]  ;;  %s3769_s6 = sld [smem:[#allocation38_spill]] }
  0xbf   : > { %2418 = vmatpush3.bf16.msra.mxu0 %v2640_v24  ;;  %v1127_v34 = vsub.s32 0, %v1126_v32  ;;  %v2318_v57 = vld [vmem:[%s887_s8] ss:$0 sm:$0xff]  ;;  %s2897_s8 = smov 104   ;;  %s3771_s22 = sld [smem:[#allocation39_spill]] }
  0xc0   : > { %2419 = vmatprep.subr.bf16.mxu0 %v2893_v2  ;;  %p2349_p3 = scmp.ne.s32.totalorder %s2870_s1, 1 }
  0xc1   : > { %2404 = vmatpush3.bf16.msra.mxu1 %v2637_v3  ;;  %s3764_s9 = scalar_lea.vmem %s3763_s29, %s3294_s10 }
  0xc2   : > { %2409 = vmatprep.subr.bf16.mxu1 %v2893_v2  ;;  %v2314_v13 = vld [vmem:[%s3764_s9] ss:$0 sm:$0xff]  ;;  %s3766_s11 = scalar_lea.vmem %s3765_s26, %s3291_s24 }
  0xc3   : > { %s3762_s15 = scalar_lea.vmem %s3761_s12, %s3294_s10  ;;  %2420 = vmatpush3.bf16.msra.mxu0 %v2641_v25  ;;  %v923_v30 = vld [vmem:[%s3766_s11] sm:$0x1] }
  0xc4   : > { %2406 = vmatmul.mubr.msk.bf16.vlgmr.msra.gmra.mrb[0].mxu1 %vm950_vm2, %v926_v6  ;;  %v2310_v12 = vld [vmem:[%s3762_s15] ss:$0 sm:$0xff]  ;;  %2431 = vmatprep.subr.bf16.mxu0 %v2893_v2  ;;  %v2309_v31 = vadd.f32 -1.0, %v923_v30  ;;  %s3770_s12 = scalar_lea.vmem %s3769_s6, %s3294_s10 }
  0xc5   : > { %2410 = vmatpush3.bf16.msra.mxu1 %v2638_v5  ;;  %2413 = vmatprep.mubr.msk.bf16.mxu1 %vm2894_vm1, %v2893_v2  ;;  %s3772_s29 = scalar_lea.vmem %s3771_s22, %s3294_s10 }
  0xc6   : > { %2411 = vmatprep.subr.bf16.mxu1 %v2893_v2  ;;  %2422 = vmatmul.mubr.msk.bf16.vlgmr.msra.gmra.mrb[0].mxu0 %vm950_vm2, %v926_v6  ;;  %v925_v33 = vmul.f32 1e+30, %v2309_v31 }
  0xc7   : > { %2433 = vmatprep.mubr.msk.bf16.mxu0 %vm2894_vm1, %v2893_v2 }
  0xc8   : > { %v3431_v35 = vrot.slane %v925_v33, %v1127_v34 }
  0xc9   : > { %2412 = vmatpush3.bf16.msra.mxu1 %v2639_v7 }
  0xca   : > { %2425 = vmatprep.subr.bf16.mxu1 %v2893_v2 }
  0xcc   : > { %2414 = vmatmul.mubr.msk.bf16.vlgmr.msra.gmra.mrb[4].mxu1 %vm950_vm2, %v926_v6 }
  0xcd   : > { %2427 = vmatprep.mubr.msk.bf16.mxu1 %vm2894_vm1, %v2893_v2 }
 0x197   : > { %v988_v8 = vpop.f32.mrb[0].mxu1 }
 0x198   : > { %v2407_v9 = vpop.f32.mrb[1].mxu1  ;;  %v989_v14 = vadd.f32 %v2310_v12, %v988_v8  ;;  %v1352_v8 = vld [vmem:[%s3768_s21 + $0x4] sm:$0xf] }
 0x199   : > { %v991_v10 = vpop.f32.mrb[2].mxu1  ;;  %v1114_v51 = vpop.f32.mrb[0].mxu0  ;;  %v1357_v9 = vsel %vm1192_vm4, %v1352_v8, 0 }
 0x19a   : > { %v2408_v11 = vpop.f32.mrb[3].mxu1  ;;  %v1120_v19 = vmul.f32 0.35355338, %v989_v14  ;;  %v2423_v52 = vpop.f32.mrb[1].mxu0  ;;  %v1115_v58 = vadd.f32 %v2318_v57, %v1114_v51  ;;  %v1237_v14 = vld [vmem:[%s3768_s21] sm:$0xf] }
 0x19b   : > { %v1117_v53 = vpop.f32.mrb[2].mxu0 }
 0x19c   : > { %v3405_v23 = vpack.c.bf16 %v1120_v19, %v1120_v19  ;;  %v2424_v54 = vpop.f32.mrb[3].mxu0  ;;  %v3443_v59 = vpack.c.bf16 %v1115_v58, %v1115_v58 }
 0x19e   : > { %v1194_v60 = vsel %vm1192_vm4, %v3443_v59, 0 }
 0x19f   : > { %v1051_v15 = vpop.f32.mrb[4].mxu1  ;;  %2432 = vmatpush3.bf16.msra.mxu0 %v1194_v60 }
 0x1a0   : > { %v1052_v16 = vadd.f32 %v2314_v13, %v1051_v15  ;;  %v2415_v17 = vpop.f32.mrb[5].mxu1  ;;  %2443 = vmatprep.subr.bf16.mxu0 %v2893_v2 }
 0x1a1   : > { %v1054_v18 = vpop.f32.mrb[6].mxu1  ;;  %v1403_v17 = vsel %vm1192_vm4, %v1237_v14, 0 }
 0x1a2   : > { %v3399_v20 = vpack.c.bf16 %v1052_v16, %v1052_v16  ;;  %v2416_v21 = vpop.f32.mrb[7].mxu1 }
 0x1a4   : > { %1242 = vrot.lane.b32.xlu0 %v3399_v20, %s2895_s30  ;;  %v1135_v22 = vsel %vm1130_vm3, %v3399_v20, 0 }
 0x1a5   : > { %2426 = vmatpush3.bf16.xpose.msra.mxu1 %v1135_v22 }
 0x1a6   : > { %2437 = vmatprep.subr.bf16.mxu1 %v2893_v2 }
 0x1a8   : > { %1239 = vrot.lane.b32.xlu0 %v3405_v23, %s2895_s30 }
 0x1ac   : > { %2428 = vmatmul.mubr.msk.bf16.vlgmr.msra.gmra.mrb[8].mxu1 %vm1130_vm3, %v3405_v23 }
 0x1ad   : > { %2439 = vmatprep.mubr.msk.bf16.mxu1 %vm2894_vm1, %v2893_v2 }
 0x216   : > { %v1243_v26 = vpop.permute.xlu0 %1242 }
 0x217   : > { %v1248_v27 = vsel %vm1130_vm3, %v1243_v26, 0 }
 0x218   : > { %2438 = vmatpush3.bf16.xpose.msra.mxu1 %v1248_v27 }
 0x219   : > { %2449 = vmatprep.subr.bf16.mxu1 %v2893_v2 }
 0x21a   : > { %v1240_v28 = vpop.permute.xlu0 %1239 }
 0x21f   : > { %2440 = vmatmul.mubr.msk.bf16.vlgmr.msra.gmra.mrb[12].mxu1 %vm1130_vm3, %v1240_v28 }
 0x220   : > { %2451 = vmatprep.mubr.msk.bf16.mxu1 %vm2894_vm1, %v2893_v2  ;;  %2450 = vmatpush3.bf16.msra.mxu1 %v1357_v9 }
 0x221   : > { %2461 = vmatprep.subr.bf16.mxu1 %v2893_v2 }
 0x27f   : > { %v1171_v36 = vpop.f32.mrb[8].mxu1 }
 0x280   : > { %v1172_v37 = vadd.f32 %v1171_v36, %v3431_v35  ;;  %v2429_v38 = vpop.f32.mrb[9].mxu1 }
 0x281   : > { %v1174_v39 = vpop.f32.mrb[10].mxu1 }
 0x282   : > { %v2430_v40 = vpop.f32.mrb[11].mxu1  ;;  %v1177_v41 = vsel %vm1130_vm3, %v1172_v37, -inf }
 0x283   : > { %1178 = vmax.xlane.f32.xlu1 %v1177_v41 }
 0x2f2   : > { %v1284_v42 = vpop.f32.mrb[12].mxu1 }
 0x2f3   : > { %v1285_v43 = vadd.f32 %v1284_v42, %v3431_v35  ;;  %v2441_v44 = vpop.f32.mrb[13].mxu1 }
 0x2f4   : > { %v1287_v45 = vpop.f32.mrb[14].mxu1 }
 0x2f5   : > { %v2442_v46 = vpop.f32.mrb[15].mxu1  ;;  %v1290_v47 = vsel %vm1130_vm3, %v1285_v43, -inf }
 0x2f6   : > { %1291 = vmax.xlane.f32.xlu1 %v1290_v47 }
 0x310   : > { %v1179_v48 = vpop.xlane.xlu1 %1178 }
 0x311   : > { %v1180_v49 = vsub.f32 %v1172_v37, %v1179_v48 }
 0x313   : > { %v1181_v50 = vmul.f32 1.442695, %v1180_v49 }
 0x315   : > { %2648 = vpow2.f32 %v1181_v50 }
 0x31f   : > { %v2649_v55 = vpop.eup %2648 }
 0x320   : > { %v1183_v56 = vsel %vm1130_vm3, %v2649_v55, 0.0 }
 0x321   : > { %1184 = vadd.xlane.f32.xlu0 %v1183_v56 }
 0x337   : > { %1507 = vrot.lane.b32.xlu0 %v3443_v59, %s2896_s19 }
 0x383   : > { %v1292_v61 = vpop.xlane.xlu1 %1291 }
 0x384   : > { %v1293_v62 = vsub.f32 %v1285_v43, %v1292_v61 }
 0x386   : > { %v1294_v63 = vmul.f32 1.442695, %v1293_v62 }
 0x388   : > { %2650 = vpow2.f32 %v1294_v63 }
 0x392   : > { %v2651_v0 = vpop.eup %2650 }
 0x393   : > { %v1296_v1 = vsel %vm1130_vm3, %v2651_v0, 0.0 }
 0x394   : > { %1297 = vadd.xlane.f32.xlu1 %v1296_v1 }
 0x3a5   : > { %1303 = vrot.lane.b32.xlu1 %v3443_v59, %s2895_s30 }
 0x3a9   : > { %1447 = vrot.lane.b32.xlu1 %v3399_v20, %s2896_s19 }
 0x3ad   : > { %1445 = vrot.lane.b32.xlu1 %v3405_v23, %s2896_s19 }
 0x3ae   : > { %v1185_v3 = vpop.xlane.xlu0 %1184 }
 0x3af   : > { %2652 = vrcp.f32 %v1185_v3 }
 0x3b2   : > { %v1508_v18 = vpop.permute.xlu0 %1507 }
 0x3b3   : > { %v1513_v25 = vsel %vm1192_vm4, %v1508_v18, 0  ;;  %v1715_v18 = vld [vmem:[%s3768_s21 + $0xc] sm:$0xf] }
 0x3b9   : > { %v2653_v5 = vpop.eup %2652 }
 0x3ba   : > { %v1187_v6 = vmul.f32 %v2653_v5, %v2649_v55 }
 0x3bc   : > { %v1188_v7 = vpack.c.bf16 %v1187_v6, %v1187_v6 }
 0x3be   : > { %2434 = vmatmul.mubr.msk.bf16.vlgmr.msra.gmra.mrb[4].mxu0 %vm1130_vm3, %v1188_v7 }
 0x3bf   : > { %2445 = vmatprep.mubr.msk.bf16.mxu0 %vm2894_vm1, %v2893_v2 }
 0x421   : > { %v1298_v10 = vpop.xlane.xlu1 %1297 }
 0x422   : > { %2654 = vrcp.f32 %v1298_v10 }
 0x425   : > { %v1304_v11 = vpop.permute.xlu1 %1303 }
 0x426   : > { %v1309_v12 = vsel %vm1192_vm4, %v1304_v11, 0 }
 0x427   : > { %2444 = vmatpush3.bf16.msra.mxu0 %v1309_v12 }
 0x428   : > { %2455 = vmatprep.subr.bf16.mxu0 %v2893_v2 }
 0x429   : > { %v1448_v27 = vpop.permute.xlu1 %1447 }
 0x42a   : > { %v1453_v32 = vsel %vm1130_vm3, %v1448_v27, 0 }
 0x42c   : > { %v2655_v13 = vpop.eup %2654 }
 0x42d   : > { %v1300_v15 = vmul.f32 %v2655_v13, %v2651_v0  ;;  %v1446_v34 = vpop.permute.xlu1 %1445 }
 0x42f   : > { %v1301_v16 = vpack.c.bf16 %v1300_v15, %v1300_v15 }
 0x431   : > { %2446 = vmatmul.mubr.msk.bf16.vlgmr.msra.gmra.mrb[8].mxu0 %vm1130_vm3, %v1301_v16 }
 0x432   : > { %2456 = vmatpush3.bf16.msra.mxu0 %v1403_v17  ;;  %2457 = vmatprep.mubr.msk.bf16.mxu0 %vm2894_vm1, %v2893_v2 }
 0x433   : > { %2467 = vmatprep.subr.bf16.mxu0 %v2893_v2 }
 0x491   : > { %v1230_v19 = vpop.f32.mrb[4].mxu0 }
 0x492   : > { %v1236_v21 = vpack.c.bf16 %v1230_v19, %v1230_v19  ;;  %v2435_v22 = vpop.f32.mrb[5].mxu0 }
 0x493   : > { %v1233_v24 = vpop.f32.mrb[6].mxu0 }
 0x494   : > { %v2436_v26 = vpop.f32.mrb[7].mxu0  ;;  %2458 = vmatmul.mubr.msk.bf16.vlgmr.msra.gmra.mrb[12].mxu0 %vm1130_vm3, %v1236_v21 }
 0x495   : > { %2468 = vmatpush3.bf16.msra.mxu0 %v1513_v25  ;;  %2469 = vmatprep.mubr.msk.bf16.mxu0 %vm2894_vm1, %v2893_v2 }
 0x496   : > { %2479 = vmatprep.subr.bf16.mxu0 %v2893_v2 }
 0x504   : > { %v1345_v28 = vpop.f32.mrb[8].mxu0 }
 0x505   : > { %v1351_v29 = vpack.c.bf16 %v1345_v28, %v1345_v28  ;;  %v2447_v30 = vpop.f32.mrb[9].mxu0 }
 0x506   : > { %v1348_v31 = vpop.f32.mrb[10].mxu0 }
 0x507   : > { %v2448_v33 = vpop.f32.mrb[11].mxu0  ;;  %2452 = vmatmul.mubr.msk.bf16.vlgmr.msra.gmra.mrb[16].mxu1 %vm1130_vm3, %v1351_v29 }
 0x508   : > { %2462 = vmatpush3.bf16.xpose.msra.mxu1 %v1453_v32  ;;  %2463 = vmatprep.mubr.msk.bf16.mxu1 %vm2894_vm1, %v2893_v2 }
 0x509   : > { %2473 = vmatprep.subr.bf16.mxu1 %v2893_v2 }
 0x50f   : > { %2464 = vmatmul.mubr.msk.bf16.vlgmr.msra.gmra.mrb[20].mxu1 %vm1130_vm3, %v1446_v34 }
 0x510   : > { %2475 = vmatprep.mubr.msk.bf16.mxu1 %vm2894_vm1, %v2893_v2 }
 0x567   : > { %v1439_v36 = vpop.f32.mrb[12].mxu0 }
 0x568   : > { %v2459_v37 = vpop.f32.mrb[13].mxu0 }
 0x569   : > { %v1442_v38 = vpop.f32.mrb[14].mxu0 }
 0x56a   : > { %v2460_v39 = vpop.f32.mrb[15].mxu0  ;;  %v2334_v38 = vld [vmem:[%s3770_s12] ss:$0 sm:$0xff] }
 0x5da   : > { %v1393_v40 = vpop.f32.mrb[16].mxu1 }
 0x5db   : > { %v3481_v41 = vadd.f32 %v1439_v36, %v1393_v40  ;;  %v2453_v42 = vpop.f32.mrb[17].mxu1 }
 0x5dc   : > { %v1396_v43 = vpop.f32.mrb[18].mxu1 }
 0x5dd   : > { %v2454_v44 = vpop.f32.mrb[19].mxu1 }
 0x5e2   : > { %v1489_v45 = vpop.f32.mrb[20].mxu1 }
 0x5e3   : > { %v1490_v46 = vadd.f32 %v1489_v45, %v3431_v35  ;;  %v2465_v47 = vpop.f32.mrb[21].mxu1 }
 0x5e4   : > { %v1492_v48 = vpop.f32.mrb[22].mxu1 }
 0x5e5   : > { %v2466_v49 = vpop.f32.mrb[23].mxu1  ;;  %v1495_v50 = vsel %vm1130_vm3, %v1490_v46, -inf }
 0x5e6   : > { %1496 = vmax.xlane.f32.xlu1 %v1495_v50 }
 0x673   : > { %v1497_v51 = vpop.xlane.xlu1 %1496 }
 0x674   : > { %v1498_v52 = vsub.f32 %v1490_v46, %v1497_v51  ;;  %v2642_v51 = vld [vmem:[%s745_s13] sm:$0xff]  }
 0x676   : > { %v1499_v53 = vmul.f32 1.442695, %v1498_v52  ;;  %v2643_v52 = vld [vmem:[%s745_s13 + $0x8] sm:$0xff]   ;;  %s3773_s13 = sld [smem:[#allocation40_spill]] }
 0x678   : > { %2656 = vpow2.f32 %v1499_v53 }
 0x67c   : > { %s3774_s30 = scalar_lea.vmem %s3773_s13, %s3294_s10 }
 0x682   : > { %v2657_v54 = vpop.eup %2656 }
 0x683   : > { %v1501_v55 = vsel %vm1130_vm3, %v2657_v54, 0.0 }
 0x684   : > { %1502 = vadd.xlane.f32.xlu0 %v1501_v55 }
 0x69a   : > { %1606 = vrot.lane.b32.xlu0 %v3399_v20, %s2897_s8 }
 0x69e   : > { %1604 = vrot.lane.b32.xlu0 %v3405_v23, %s2897_s8  ;;  %v1556_v23 = vld [vmem:[%s3768_s21 + $0x8] sm:$0xf] }
 0x69f   : > { %v1561_v63 = vsel %vm1192_vm4, %v1556_v23, 0  ;;  %v2645_v23 = vld [vmem:[%s3346_s5 + $0x8] sm:$0xff]  }
 0x6a0   : > { %2474 = vmatpush3.bf16.msra.mxu1 %v1561_v63  ;;  %v2646_v63 = vld [vmem:[%s3346_s5 + $0x10] sm:$0xff]  }
 0x6a1   : > { %2485 = vmatprep.subr.bf16.mxu1 %v2893_v2 }
 0x711   : > { %v1503_v56 = vpop.xlane.xlu0 %1502 }
 0x712   : > { %2658 = vrcp.f32 %v1503_v56  ;;  %v2335_v56 = vld [vmem:[%s3772_s29] ss:$0 sm:$0xff] }
 0x715   : > { %v1607_v60 = vpop.permute.xlu0 %1606 }
 0x716   : > { %v1612_v62 = vsel %vm1130_vm3, %v1607_v60, 0 }
 0x719   : > { %v1605_v20 = vpop.permute.xlu0 %1604 }
 0x71c   : > { %v2659_v57 = vpop.eup %2658 }
 0x71d   : > { %v1505_v58 = vmul.f32 %v2659_v57, %v2657_v54 }
 0x71f   : > { %v1506_v61 = vpack.c.bf16 %v1505_v58, %v1505_v58  ;;  %v2336_v58 = vld [vmem:[%s3774_s30] ss:$0 sm:$0xff] }
 0x721   : > { %2470 = vmatmul.mubr.msk.bf16.vlgmr.msra.gmra.mrb[16].mxu0 %vm1130_vm3, %v1506_v61 }
 0x722   : > { %2480 = vmatpush3.bf16.xpose.msra.mxu0 %v1612_v62  ;;  %2481 = vmatprep.mubr.msk.bf16.mxu0 %vm2894_vm1, %v2893_v2 }
 0x723   : > { %2491 = vmatprep.subr.bf16.mxu0 %v2893_v2 }
 0x729   : > { %2482 = vmatmul.mubr.msk.bf16.vlgmr.msra.gmra.mrb[20].mxu0 %vm1130_vm3, %v1605_v20  ;;  %v2644_v20 = vld [vmem:[%s3346_s5] sm:$0xff]  }
 0x72a   : > { %2493 = vmatprep.mubr.msk.bf16.mxu0 %vm2894_vm1, %v2893_v2 }
 0x7f4   : > { %v1549_v0 = vpop.f32.mrb[16].mxu0 }
 0x7f5   : > { %v1555_v1 = vpack.c.bf16 %v1549_v0, %v1549_v0  ;;  %v2471_v3 = vpop.f32.mrb[17].mxu0  ;;  %v2647_v0 = vld [vmem:[%s3346_s5 + $0x18] sm:$0xff]  }
 0x7f6   : > { %v1552_v5 = vpop.f32.mrb[18].mxu0 }
 0x7f7   : > { %v2472_v6 = vpop.f32.mrb[19].mxu0  ;;  %2476 = vmatmul.mubr.msk.bf16.vlgmr.msra.gmra.mrb[24].mxu1 %vm1130_vm3, %v1555_v1  ;;  %v2337_v1 = vld [vmem:[%s899_s0] ss:$0 sm:$0xff] }
 0x7f8   : > { %2487 = vmatprep.mubr.msk.bf16.mxu1 %vm2894_vm1, %v2893_v2 }
 0x7fc   : > { %v1648_v7 = vpop.f32.mrb[20].mxu0 }
 0x7fd   : > { %v1649_v8 = vadd.f32 %v1648_v7, %v3431_v35  ;;  %v2483_v9 = vpop.f32.mrb[21].mxu0  ;;  %v1720_v35 = vsel %vm1192_vm4, %v1715_v18, 0  ;;  %v2341_v18 = vld [vmem:[%s907_s2] ss:$0 sm:$0xff] }
 0x7fe   : > { %v1651_v10 = vpop.f32.mrb[22].mxu0  ;;  %2492 = vmatpush3.bf16.msra.mxu0 %v1720_v35 }
 0x7ff   : > { %v2484_v11 = vpop.f32.mrb[23].mxu0  ;;  %v1654_v12 = vsel %vm1130_vm3, %v1649_v8, -inf  ;;  %2505 = vmatprep.subr.bf16.mxu0 %v2893_v2 }
 0x800   : > { %1655 = vmax.xlane.f32.xlu0 %v1654_v12 }
 0x88d   : > { %v1656_v13 = vpop.xlane.xlu0 %1655 }
 0x88e   : > { %v1657_v14 = vsub.f32 %v1649_v8, %v1656_v13 }
 0x890   : > { %v1658_v15 = vmul.f32 1.442695, %v1657_v14 }
 0x892   : > { %2660 = vpow2.f32 %v1658_v15 }
 0x89c   : > { %v2661_v16 = vpop.eup %2660 }
 0x89d   : > { %v1660_v17 = vsel %vm1130_vm3, %v2661_v16, 0.0 }
 0x89e   : > { %1661 = vadd.xlane.f32.xlu1 %v1660_v17 }
 0x8af   : > { %1666 = vrot.lane.b32.xlu1 %v3443_v59, %s2897_s8 }
 0x8ca   : > { %v1597_v19 = vpop.f32.mrb[24].mxu1 }
 0x8cb   : > { %v1603_v21 = vadd.f32 %v1597_v19, %v3481_v41  ;;  %v2477_v22 = vpop.f32.mrb[25].mxu1 }
 0x8cc   : > { %v1600_v24 = vpop.f32.mrb[26].mxu1 }
 0x8cd   : > { %v2478_v25 = vpop.f32.mrb[27].mxu1 }
 0x92b   : > { %v1662_v26 = vpop.xlane.xlu1 %1661 }
 0x92c   : > { %2662 = vrcp.f32 %v1662_v26 }
 0x92f   : > { %v1667_v27 = vpop.permute.xlu1 %1666 }
 0x930   : > { %v1672_v28 = vsel %vm1192_vm4, %v1667_v27, 0 }
 0x931   : > { %2486 = vmatpush3.bf16.msra.mxu1 %v1672_v28 }
 0x932   : > { %2497 = vmatprep.subr.bf16.mxu1 %v2893_v2 }
 0x936   : > { %v2663_v59 = vpop.eup %2662 }
 0x937   : > { %v1664_v29 = vmul.f32 %v2663_v59, %v2661_v16 }
 0x939   : > { %v1665_v30 = vpack.c.bf16 %v1664_v29, %v1664_v29 }
 0x93b   : > { %2488 = vmatmul.mubr.msk.bf16.vlgmr.msra.gmra.mrb[28].mxu1 %vm1130_vm3, %v1665_v30 }
 0x93c   : > { %2501 = vmatprep.mubr.msk.bf16.mxu1 %vm2894_vm1, %v2893_v2  ;;  %2498 = vmatpush3.bf16.msra.mxu1 %v2642_v51 }
 0x93d   : > { %2499 = vmatprep.subr.bf16.mxu1 %v2893_v2 }
 0x940   : > { %2500 = vmatpush3.bf16.msra.mxu1 %v2643_v52 }
 0xa0e   : > { %v1708_v31 = vpop.f32.mrb[28].mxu1 }
 0xa0f   : > { %v1714_v32 = vpack.c.bf16 %v1708_v31, %v1708_v31  ;;  %v2489_v33 = vpop.f32.mrb[29].mxu1 }
 0xa10   : > { %v1711_v34 = vpop.f32.mrb[30].mxu1 }
 0xa11   : > { %v2490_v36 = vpop.f32.mrb[31].mxu1  ;;  %2494 = vmatmul.mubr.msk.bf16.vlgmr.msra.gmra.mrb[24].mxu0 %vm1130_vm3, %v1714_v32 }
 0xa12   : > { %2513 = vmatprep.mubr.msk.bf16.mxu0 %vm2894_vm1, %v2893_v2  ;;  %2506 = vmatpush3.bf16.msra.mxu0 %v2644_v20  ;;  %v2347_v36 = vld [vmem:[%s910_s14] ss:$0 sm:$0xff] }
 0xa13   : > { %2507 = vmatprep.subr.bf16.mxu0 %v2893_v2 }
 0xa16   : > { %2508 = vmatpush3.bf16.msra.mxu0 %v2645_v23 }
 0xa17   : > { %2509 = vmatprep.subr.bf16.mxu0 %v2893_v2 }
 0xa1a   : > { %2510 = vmatpush3.bf16.msra.mxu0 %v2646_v63 }
 0xa1b   : > { %2511 = vmatprep.subr.bf16.mxu0 %v2893_v2 }
 0xa1e   : > { %2512 = vmatpush3.bf16.msra.mxu0 %v2647_v0 }
 0xae4   : > { %v1756_v37 = vpop.f32.mrb[24].mxu0 }
 0xae5   : > { %v1762_v39 = vadd.f32 %v1756_v37, %v1603_v21  ;;  %v2495_v40 = vpop.f32.mrb[25].mxu0 }
 0xae6   : > { %v1759_v41 = vpop.f32.mrb[26].mxu0 }
 0xae7   : > { %v1770_v42 = vadd.f32 %v2334_v38, %v1762_v39  ;;  %v2496_v43 = vpop.f32.mrb[27].mxu0  ;;  %v2348_v38 = vld [vmem:[%s913_s16] ss:$0 sm:$0xff] }
 0xae9   : > { %v1771_v44 = vadd.f32 %v1770_v42, %v3371_v4 }
 0xaeb   : > { %v1774_v45 = vsel %vm950_vm2, %v1771_v44, 0.0 }
 0xaec   : > { %1775 = vadd.xlane.f32.xlu1 %v1774_v45 }
 0xb79   : > { %v1776_v46 = vpop.xlane.xlu1 %1775 }
 0xb7a   : > { %v1778_v47 = vmul.f32 0.03125, %v1776_v46 }
 0xb7c   : > { %v1779_v48 = vsub.f32 %v1771_v44, %v1778_v47 }
 0xb7e   : > { %v1780_v49 = vmul.f32 %v1779_v48, %v1779_v48 }
 0xb80   : > { %v1781_v50 = vsel %vm950_vm2, %v1780_v49, 0.0 }
 0xb81   : > { %1782 = vadd.xlane.f32.xlu0 %v1781_v50 }
 0xc0e   : > { %v1783_v4 = vpop.xlane.xlu0 %1782 }
 0xc0f   : > { %v1784_v53 = vmul.f32 0.03125, %v1783_v4 }
 0xc11   : > { %v1785_v54 = vadd.f32 1e-12, %v1784_v53 }
 0xc13   : > { %2664 = vrsqrt.f32 %v1785_v54 }
 0xc1d   : > { %v2665_v55 = vpop.eup %2664 }
 0xc1e   : > { %v1787_v57 = vmul.f32 %v2665_v55, %v1779_v48 }
 0xc20   : > { %v1794_v60 = vmul.f32 %v2335_v56, %v1787_v57 }
 0xc22   : > { %v1801_v61 = vadd.f32 %v2336_v58, %v1794_v60 }
 0xc24   : > { %v1802_v62 = vpack.c.bf16 %v1801_v61, %v1801_v61 }
 0xc26   : > { %2502 = vmatmul.mubr.msk.bf16.vlgmr.msra.gmra.mrb[32].mxu1 %vm950_vm2, %v1802_v62 }
 0xcf9   : > { %v1863_v3 = vpop.f32.mrb[32].mxu1 }
 0xcfa   : > { %v1864_v5 = vadd.f32 %v2337_v1, %v1863_v3  ;;  %v2503_v6 = vpop.f32.mrb[33].mxu1 }
 0xcfb   : > { %v1866_v7 = vpop.f32.mrb[34].mxu1 }
 0xcfc   : > { %v1869_v8 = vmul.f32 %v1864_v5, %v1864_v5  ;;  %v2504_v9 = vpop.f32.mrb[35].mxu1 }
 0xcfe   : > { %v1870_v10 = vmul.f32 %v1869_v8, %v1864_v5 }
 0xd00   : > { %v1871_v11 = vmul.f32 0.044715, %v1870_v10 }
 0xd02   : > { %v1872_v12 = vadd.f32 %v1871_v11, %v1864_v5 }
 0xd04   : > { %v1873_v13 = vmul.f32 0.7978846, %v1872_v12 }
 0xd06   : > { %2666 = vtanh.f32 %v1873_v13 }
 0xd10   : > { %v2667_v2 = vpop.eup %2666 }
 0xd11   : > { %v1875_v14 = vadd.f32 1.0, %v2667_v2 }
 0xd13   : > { %v1876_v15 = vmul.f32 0.5, %v1875_v14 }
 0xd15   : > { %v1877_v16 = vmul.f32 %v1876_v15, %v1864_v5 }
 0xd17   : > { %v1878_v17 = vpack.c.bf16 %v1877_v16, %v1877_v16 }
 0xd19   : > { %2514 = vmatmul.mubr.msk.bf16.vlgmr.msra.gmra.mrb[28].mxu0 %vm1918_vm5, %v1878_v17 }
 0xdec   : > { %v1956_v35 = vpop.f32.mrb[28].mxu0 }
 0xded   : > { %v1957_v19 = vadd.f32 %v2341_v18, %v1956_v35  ;;  %v2515_v21 = vpop.f32.mrb[29].mxu0 }
 0xdee   : > { %v1959_v22 = vpop.f32.mrb[30].mxu0 }
 0xdef   : > { %v2516_v24 = vpop.f32.mrb[31].mxu0  ;;  %v1962_v25 = vadd.f32 %v1957_v19, %v1801_v61 }
 0xdf1   : > { %v1965_v26 = vsel %vm950_vm2, %v1962_v25, 0.0 }
 0xdf2   : > { %1966 = vadd.xlane.f32.xlu0 %v1965_v26 }
 0xe7f   : > { %v1967_v27 = vpop.xlane.xlu0 %1966 }
 0xe80   : > { %v1968_v28 = vmul.f32 0.03125, %v1967_v27 }
 0xe82   : > { %v1969_v59 = vsub.f32 %v1962_v25, %v1968_v28 }
 0xe84   : > { %v1970_v29 = vmul.f32 %v1969_v59, %v1969_v59 }
 0xe86   : > { %v1971_v30 = vsel %vm950_vm2, %v1970_v29, 0.0 }
 0xe87   : > { %1972 = vadd.xlane.f32.xlu0 %v1971_v30 }
 0xf14   : > { %v1973_v31 = vpop.xlane.xlu0 %1972 }
 0xf15   : > { %v1974_v32 = vmul.f32 0.03125, %v1973_v31 }
 0xf17   : > { %v1975_v33 = vadd.f32 1e-12, %v1974_v32 }
 0xf19   : > { %2668 = vrsqrt.f32 %v1975_v33 }
 0xf23   : > { %v2669_v34 = vpop.eup %2668 }
 0xf24   : > { %v1977_v37 = vmul.f32 %v2669_v34, %v1969_v59  ;;  %1996 = sbr.rel (%p2349_p3) target bundleno = 3883 (0xf2b), region = 112 }
 0xf26   : > { %v1984_v39 = vmul.f32 %v2347_v36, %v1977_v37 }
 0xf28   : > { %v1991_v40 = vadd.f32 %v2348_v38, %v1984_v39 }
 0xf2a   : > { %1992 = vst.msk [vmem:[#allocation2] sm:$0xff] %vm950_vm2, %v1991_v40  ;;  %1997 = vst.msk [vmem:[%s3363_s7] sm:$0xff] (!%p2349_p3), %vm950_vm2, %v1991_v40 }
 0xf2b PF: > { %s3779_s8 = sld [smem:[#allocation18_spill]]  ;;  %s3780_s14 = sld [smem:[#allocation25_spill]] }
 0xf2c   : > { %s3781_s10 = sld [smem:[#allocation47_spill]]  ;;  %s2012_s12 = sshll.u32 %s3363_s7, 4  ;;  %s2013_s12 = int_to_ptr.vmem [resolvable:$true] %s2012_s12 }
 0xf2d   : > { %s1999_s15 = scalar_lea.sflag [#allocation5], %s3265_s27  ;;  %s2760_s4 = scalar_lea.vmem %s2013_s12, 128 }
 0xf2e   : > { %p2761_p9 = scmp.ne.s32.totalorder %s2013_s12, %s2760_s4  ;;  %s2898_s1 = smov [#allocation9]  }
 0xf2f   : > { %s2764_s22 = sshll.u32 %s2898_s1, 4  ;;  %s2765_s22 = int_to_ptr.vmem [resolvable:$false] %s2764_s22 }
 0xf30   : > { %s2766_s29 = scalar_lea.vmem %s2765_s22, 256  ;;  %p2767_p12 = scmp.lt.s32.totalorder %s2013_s12, %s2765_s22 }
 0xf31   : > { %s2351_s28 = sshll.u32 %s3779_s8, 7  ;;  %p3782_p5 = scmp.ne.s32.totalorder %s3780_s14, 0 }
 0xf32   : > { %s3582_s16 = scalar_lea.hbm %s3781_s10, %s2351_s28  ;;  %p2768_p2 = scmp.lt.s32.totalorder %s2766_s29, %s2760_s4 }
 0xf33   : > { %p2762_p8 = pnand %p2761_p9, %p3782_p5 }
 0xf34   : > { %p2769_p1 = por %p2768_p2, %p2767_p12 }
 0xf35   : > { %p2763_p13 = pneg %p2762_p8 }
 0xf37   : > { %p2770_p10 = pnand %p2769_p1, %p2763_p13 }
 0xf39   : > { %2773 = shalt.err (!%p2770_p10)
}
 0xf3a   : > { %s2774_s27 = scalar_lea.hbm %s3582_s16, 128  ;;  %s2778_s9 = scalar_lea.hbm %s3781_s10, 256 }
 0xf3b   : > { %p2775_p0 = scmp.ne.s32.totalorder %s3582_s16, %s2774_s27  ;;  %p2779_p4 = scmp.lt.u32.totalorder %s3582_s16, %s3781_s10 }
 0xf3c   : > { %p2780_p11 = scmp.lt.u32.totalorder %s2778_s9, %s2774_s27  ;;  %p2782_p9 = scmp.lt.u32.totalorder %s2774_s27, %s3582_s16 }
 0xf3d   : > { %p2776_p6 = pnand %p2775_p0, %p3782_p5 }
 0xf3e   : > { %p2781_p3 = por %p2780_p11, %p2779_p4 }
 0xf3f   : > { %p2777_p7 = pneg %p2776_p6 }
 0xf40   : > { %p2783_p8 = por %p2782_p9, %p2781_p3 }
 0xf42   : > { %p2784_p13 = pnand %p2783_p8, %p2777_p7 }
 0xf44   : > { %2787 = shalt.err (!%p2784_p13)
}
 0xf45   : > { %2523 = dma.vmem_to_hbm [thread:$0]  (%p3782_p5), %s2013_s12, 128, %s3582_s16, %s1999_s15  }
 0xf46 PF: > { %s3783_s18 = sld [smem:[#allocation21_spill]]  ;;  %s3784_s23 = sld [smem:[#allocation15_spill]] }
 0xf47   : > { %s3785_s26 = sld [smem:[#allocation27_spill]] }
 0xf4c   : > { %p2540_p12 = scmp.ge.s32.totalorder %s3783_s18, 2  ;;  %s2024_s0 = sand.u32 1, %s3784_s23  }
 0xf4d   : > { %p3786_p2 = scmp.ne.s32.totalorder %s3785_s26, 0  ;;  %s2025_s5 = scalar_lea.sflag [#allocation5], %s2024_s0 }
 0xf4f   : > { %p2536_p1 = pnand %p2540_p12, %p3786_p2 }
 0xf51   : > { %2841 = dma.done.wait (!%p2536_p1), %s2025_s5, 128  }
 0xf52   : > { %2843 = vsyncadd (!%p2536_p1), %s2025_s5, 4294967168  ;;  %s37_s2 = sadd.s32 1, %s3783_s18   ;;  %s3787_s27 = sld [smem:[#allocation13_spill]] }
 0xf53   : > { %p34_p10 = scmp.ge.s32.totalorder %s37_s2, 6   ;;  %s3788_s28 = sld [smem:[#allocation14_spill]] }
 0xf54   : > { %s3789_s29 = sld [smem:[#allocation23_spill]]  ;;  %s3790_s30 = sld [smem:[#allocation16_spill]] }
 0xf55   : > { %s3791_s0 = sld [smem:[#allocation17_spill]]  ;;  %s3792_s19 = sld [smem:[#allocation26_spill]] }
 0xf56   : > { %s3793_s1 = sld [smem:[#allocation19_spill]]  ;;  %s3794_s20 = sld [smem:[#allocation20_spill]] }
 0xf57   : > { %s3795_s21 = sld [smem:[#allocation22_spill]]  ;;  %s3796_s22 = sld [smem:[#allocation24_spill]] }
 0xf58   :  { %36 = sbr.rel (!%p34_p10) target bundleno = 31 (0x1f), region = 214 }
 0xf5f   :  { %2030 = vsyncpa [#allocation4], 1 }
 0xf60   :  { %2032 = vsyncpa [#allocation4 + $0x1], 1 }
 0xf61   :  { %2033 = vsyncpa [#allocation7], 1 }
 0xf62   :  { %2035 = vsyncpa [#allocation7 + $0x1], 1 }
 0xf63   :  { %2036 = vsyncpa [#allocation5], 1 }
 0xf64   :  { %2038 = vsyncpa [#allocation5 + $0x1], 1 }

</bundles_post_ra>
